<compile_context>
chip_gen: v7x
topology: tpu7x:2x2x1
jax: 0.10.0
libtpu: 0.0.40
codegen_flags: <defaults>
</compile_context>

<pallas_src>
import numpy as np

import jax
import jax.numpy as jnp
from jax.experimental import pallas as pl
from jax.experimental.pallas import tpu as pltpu

VMEM_SPEC = pl.BlockSpec(memory_space=pltpu.MemorySpace.VMEM)
_VMEM_LIMIT = 32 * 1024 * 1024


# ---------------- Pallas kernels ----------------

def _conv1_pool_relu_kernel(x_ref, w_ref, b_ref, p_ref, o_ref):
    """One image: conv1 (1->10, 5x5, valid) + bias + 2x2 maxpool + ReLU.

    x_ref : [28, 28]      f32   input image
    w_ref : [25, 24, 256] bf16  expanded weights, one [24,256] matrix per (kh,kw) tap;
                                output lane n = q*128 + s*10 + c for conv column
                                ow = 2*s + q, channel c (lanes 120..127/248..255 zero)
    b_ref : [1, 256]      f32   bias in the same lane layout
    p_ref : [24, 24]      f32   row permutation -> [even conv rows | odd conv rows]
    o_ref : [12, 128]     f32   relu(maxpool2x2(conv1)); lane = w*10 + c, pads zero
    """
    acc = jnp.zeros((24, 256), jnp.float32)
    for kh in range(5):
        for kw in range(5):
            lhs = x_ref[kh:kh + 24, kw:kw + 24].astype(jnp.bfloat16)     # [24, 24]
            acc += jnp.dot(lhs, w_ref[kh * 5 + kw],
                           preferred_element_type=jnp.float32)
    acc += b_ref[...]
    pacc = jnp.dot(p_ref[...], acc, preferred_element_type=jnp.float32)  # even|odd rows
    hmax = jnp.maximum(pacc[0:12, :], pacc[12:24, :])        # pool along H (row pairs)
    pooled = jnp.maximum(hmax[:, 0:128], hmax[:, 128:256])   # pool along W (parity groups)
    o_ref[...] = jnp.maximum(pooled, 0.0)


def _conv2_pool_relu_kernel(x_ref, w_ref, b_ref, p_ref, o_ref):
    """One image: conv2 (10->20, 5x5, valid) + bias + 2x2 maxpool + ReLU.

    x_ref : [12, 128]     f32   pooled conv1 activation (lane = w*10 + c, pads zero)
    w_ref : [5, 128, 256] bf16  expanded weights, one matrix per kh; kw and cin are
                                folded into the 128-wide K (lane) dimension
    b_ref : [1, 256]      f32
    p_ref : [8, 8]        f32   row permutation -> [even conv rows | odd conv rows]
    o_ref : [4, 128]      f32   relu(maxpool2x2(conv2)); lane = w*20 + c, pads zero
    """
    acc = jnp.zeros((8, 256), jnp.float32)
    for kh in range(5):
        lhs = x_ref[kh:kh + 8, :].astype(jnp.bfloat16)                   # [8, 128]
        acc += jnp.dot(lhs, w_ref[kh], preferred_element_type=jnp.float32)
    acc += b_ref[...]
    # TODO(synk): nn.Dropout2d is stochastic in training; eval-mode identity here.
    pacc = jnp.dot(p_ref[...], acc, preferred_element_type=jnp.float32)
    hmax = jnp.maximum(pacc[0:4, :], pacc[4:8, :])
    pooled = jnp.maximum(hmax[:, 0:128], hmax[:, 128:256])
    o_ref[...] = jnp.maximum(pooled, 0.0)


def _head_kernel(x_ref, w1_ref, b1_ref, w2_ref, b2_ref, o_ref):
    """fc1 + ReLU + fc2 + log_softmax over the whole batch (weights ~130 KB).

    x_ref : [B, 512]   f32   pooled conv2 activation, lane-dense (k = h*128 + w*20 + c)
    w1_ref: [512, 128] bf16  fc1 weight with PyTorch's NCHW flatten order folded in
    b1_ref: [1, 128]   f32
    w2_ref: [128, 10]  bf16
    b2_ref: [1, 10]    f32
    o_ref : [B, 10]    f32   log-probabilities
    """
    h = jnp.dot(x_ref[...].astype(jnp.bfloat16), w1_ref[...],
                preferred_element_type=jnp.float32) + b1_ref[...]
    h = jnp.maximum(h, 0.0)
    # TODO(synk): F.dropout(training=...) is eval-mode identity here.
    logits = jnp.dot(h.astype(jnp.bfloat16), w2_ref[...],
                     preferred_element_type=jnp.float32) + b2_ref[...]
    m = jnp.max(logits, axis=-1, keepdims=True)
    s = logits - m
    lse = jnp.log(jnp.sum(jnp.exp(s), axis=-1, keepdims=True))
    o_ref[...] = (s - lse).astype(o_ref.dtype)


# ---------------- pallas_call wrappers ----------------

def conv1_stage(x, w1e, b1e, p1):
    B = x.shape[0]
    return pl.pallas_call(
        _conv1_pool_relu_kernel,
        out_shape=jax.ShapeDtypeStruct((B, 12, 128), jnp.float32),
        grid=(B,),
        in_specs=[
            pl.BlockSpec((None, 28, 28), lambda b: (b, 0, 0)),
            pl.BlockSpec((25, 24, 256), lambda b: (0, 0, 0)),
            pl.BlockSpec((1, 256), lambda b: (0, 0)),
            pl.BlockSpec((24, 24), lambda b: (0, 0)),
        ],
        out_specs=pl.BlockSpec((None, 12, 128), lambda b: (b, 0, 0)),
        compiler_params=pltpu.CompilerParams(
            dimension_semantics=("parallel",),
            vmem_limit_bytes=_VMEM_LIMIT),
    )(x, w1e, b1e, p1)


def conv2_stage(a1, w2e, b2e, p2):
    B = a1.shape[0]
    return pl.pallas_call(
        _conv2_pool_relu_kernel,
        out_shape=jax.ShapeDtypeStruct((B, 4, 128), jnp.float32),
        grid=(B,),
        in_specs=[
            pl.BlockSpec((None, 12, 128), lambda b: (b, 0, 0)),
            pl.BlockSpec((5, 128, 256), lambda b: (0, 0, 0)),
            pl.BlockSpec((1, 256), lambda b: (0, 0)),
            pl.BlockSpec((8, 8), lambda b: (0, 0)),
        ],
        out_specs=pl.BlockSpec((None, 4, 128), lambda b: (b, 0, 0)),
        compiler_params=pltpu.CompilerParams(
            dimension_semantics=("parallel",),
            vmem_limit_bytes=_VMEM_LIMIT),
    )(a1, w2e, b2e, p2)


def head_stage(x2, wf1, bf1, wf2, bf2):
    B = x2.shape[0]
    return pl.pallas_call(
        _head_kernel,
        out_shape=jax.ShapeDtypeStruct((B, 10), jnp.float32),
        in_specs=[VMEM_SPEC] * 5,
        out_specs=VMEM_SPEC,
        compiler_params=pltpu.CompilerParams(vmem_limit_bytes=_VMEM_LIMIT),
    )(x2, wf1, bf1, wf2, bf2)


# ---------------- parameters (deterministic, PyTorch shapes) ----------------

def init_params(key):
    ks = jax.random.split(key, 8)

    def u(k, shape, fan_in):
        bound = 1.0 / (fan_in ** 0.5)
        return jax.random.uniform(k, shape, jnp.float32, -bound, bound)

    return {
        "conv1_w": u(ks[0], (10, 1, 5, 5), 1 * 5 * 5),
        "conv1_b": u(ks[1], (10,), 1 * 5 * 5),
        "conv2_w": u(ks[2], (20, 10, 5, 5), 10 * 5 * 5),
        "conv2_b": u(ks[3], (20,), 10 * 5 * 5),
        "fc1_w": u(ks[4], (50, 320), 320),
        "fc1_b": u(ks[5], (50,), 320),
        "fc2_w": u(ks[6], (10, 50), 50),
        "fc2_b": u(ks[7], (10,), 50),
    }


def prepare_params(params):
    """One-time host-side repack of PyTorch-layout weights into kernel layouts."""
    w1 = np.asarray(params["conv1_w"], np.float32)   # [10, 1, 5, 5]
    b1 = np.asarray(params["conv1_b"], np.float32)
    w2 = np.asarray(params["conv2_w"], np.float32)   # [20, 10, 5, 5]
    b2 = np.asarray(params["conv2_b"], np.float32)
    f1w = np.asarray(params["fc1_w"], np.float32)    # [50, 320]
    f1b = np.asarray(params["fc1_b"], np.float32)
    f2w = np.asarray(params["fc2_w"], np.float32)    # [10, 50]
    f2b = np.asarray(params["fc2_b"], np.float32)

    # conv1: one [24, 256] matrix per (kh, kw) tap; output lane n = q*128 + s*10 + c
    # for conv column ow = 2*s + q; only input row k = ow is nonzero.
    w1e = np.zeros((25, 24, 256), np.float32)
    b1e = np.zeros((1, 256), np.float32)
    for kh in range(5):
        for kw in range(5):
            for s in range(12):
                for q in range(2):
                    ow = 2 * s + q
                    col = q * 128 + s * 10
                    w1e[kh * 5 + kw, ow, col:col + 10] = w1[:, 0, kh, kw]
    for s in range(12):
        for q in range(2):
            b1e[0, q * 128 + s * 10: q * 128 + s * 10 + 10] = b1

    # conv2: one [128, 256] matrix per kh; kw and cin folded into K (input lane
    # k = w*10 + ci); output lane m = q*128 + s*20 + co for conv column ow = 2*s + q.
    w2e = np.zeros((5, 128, 256), np.float32)
    b2e = np.zeros((1, 256), np.float32)
    for kh in range(5):
        for s in range(4):
            for q in range(2):
                ow = 2 * s + q
                col = q * 128 + s * 20
                for kw in range(5):
                    k0 = (ow + kw) * 10
                    w2e[kh, k0:k0 + 10, col:col + 20] = w2[:, :, kh, kw].T
    for s in range(4):
        for q in range(2):
            b2e[0, q * 128 + s * 20: q * 128 + s * 20 + 20] = b2

    # fc1: fold PyTorch's NCHW flatten (k_torch = c*16 + h*4 + w) into the weight;
    # kernel-side flatten order is k = h*128 + w*20 + c (zero-padded lanes).
    wf1 = np.zeros((512, 128), np.float32)
    for h in range(4):
        for w in range(4):
            for c in range(20):
                wf1[h * 128 + w * 20 + c, :50] = f1w[:, c * 16 + h * 4 + w]
    bf1 = np.zeros((1, 128), np.float32)
    bf1[0, :50] = f1b
    wf2 = np.zeros((128, 10), np.float32)
    wf2[:50, :] = f2w.T
    bf2 = f2b.reshape(1, 10)

    # Row permutations regrouping conv output rows into [even | odd] for the pool.
    p1 = np.zeros((24, 24), np.float32)
    for r in range(12):
        p1[r, 2 * r] = 1.0
        p1[r + 12, 2 * r + 1] = 1.0
    p2 = np.zeros((8, 8), np.float32)
    for r in range(4):
        p2[r, 2 * r] = 1.0
        p2[r + 4, 2 * r + 1] = 1.0

    bf16 = jnp.bfloat16
    return {
        "w1e": jnp.asarray(w1e, bf16), "b1e": jnp.asarray(b1e),
        "w2e": jnp.asarray(w2e, bf16), "b2e": jnp.asarray(b2e),
        "p1": jnp.asarray(p1), "p2": jnp.asarray(p2),
        "wf1": jnp.asarray(wf1, bf16), "bf1": jnp.asarray(bf1),
        "wf2": jnp.asarray(wf2, bf16), "bf2": jnp.asarray(bf2),
    }


# ---------------- forward pass (matches Net.forward, eval mode) ----------------

@jax.jit
def net_forward(prep, x_nchw):
    B = x_nchw.shape[0]
    x = x_nchw.astype(jnp.float32).reshape(B, 28, 28)                 # NCHW, Cin=1
    a1 = conv1_stage(x, prep["w1e"], prep["b1e"], prep["p1"])         # [B, 12, 128]
    a2 = conv2_stage(a1, prep["w2e"], prep["b2e"], prep["p2"])        # [B,  4, 128]
    x2 = a2.reshape(B, 512)                                           # lane-dense FC input
    return head_stage(x2, prep["wf1"], prep["bf1"], prep["wf2"], prep["bf2"])  # [B, 10]


# ---------------- plain-JAX eval-mode reference (for self-check) ----------------

def reference_forward(params, x):
    dn = ("NCHW", "OIHW", "NCHW")
    y = jax.lax.conv_general_dilated(x, params["conv1_w"], (1, 1), "VALID",
                                     dimension_numbers=dn)
    y = y + params["conv1_b"].reshape(1, -1, 1, 1)
    y = jax.lax.reduce_window(y, -jnp.inf, jax.lax.max, (1, 1, 2, 2), (1, 1, 2, 2), "VALID")
    y = jnp.maximum(y, 0.0)
    y = jax.lax.conv_general_dilated(y, params["conv2_w"], (1, 1), "VALID",
                                     dimension_numbers=dn)
    y = y + params["conv2_b"].reshape(1, -1, 1, 1)
    y = jax.lax.reduce_window(y, -jnp.inf, jax.lax.max, (1, 1, 2, 2), (1, 1, 2, 2), "VALID")
    y = jnp.maximum(y, 0.0)
    y = y.reshape(y.shape[0], -1)
    y = jnp.maximum(y @ params["fc1_w"].T + params["fc1_b"], 0.0)
    y = y @ params["fc2_w"].T + params["fc2_b"]
    return jax.nn.log_softmax(y, axis=1)


if __name__ == "__main__":
    key = jax.random.PRNGKey(0)
    pkey, xkey = jax.random.split(key)
    params = init_params(pkey)
    prep = prepare_params(params)
    x = jax.random.normal(xkey, (2, 1, 28, 28), jnp.float32)

    out = net_forward(prep, x)
    jax.block_until_ready(out)
    assert out.shape == (2, 10), out.shape
    # log-softmax rows must sum to ~1 in prob space
    assert bool(jnp.all(jnp.abs(jnp.sum(jnp.exp(out), axis=1) - 1.0) < 1e-4))
    # cross-check against the plain-JAX eval-mode reference (loose tol for bf16 MXU)
    ref = reference_forward(params, x)
    err = float(jnp.max(jnp.abs(out - ref)))
    assert err < 0.1, err
    print("KERNEL_OK")
</pallas_src>

<mosaic_0001>
module attributes {stable_mosaic.version = 11 : i64} {
  func.func @_conv2_pool_relu_kernel(%arg0: i32, %arg1: memref<1x12x128xf32, #tpu.memory_space<vmem>>, %arg2: memref<5x128x256xbf16, #tpu.memory_space<vmem>>, %arg3: memref<1x256xf32, #tpu.memory_space<vmem>>, %arg4: memref<8x8xf32, #tpu.memory_space<vmem>>, %arg5: memref<1x4x128xf32, #tpu.memory_space<vmem>>) attributes {dimension_semantics = [#tpu.dimension_semantics<parallel>], iteration_bounds = array<i64: 2>, scalar_prefetch = 0 : i64, scratch_operands = 0 : i64, tpu.core_type = #tpu.core_type<tc>, window_params = [{transform_indices = @transform_0, window_bounds = array<i64: 1, 12, 128>}, {pipeline_mode = #tpu.pipeline_mode<synchronous>, transform_indices = @transform_1, window_bounds = array<i64: 5, 128, 256>}, {pipeline_mode = #tpu.pipeline_mode<synchronous>, transform_indices = @transform_2, window_bounds = array<i64: 1, 256>}, {pipeline_mode = #tpu.pipeline_mode<synchronous>, transform_indices = @transform_3, window_bounds = array<i64: 8, 8>}, {transform_indices = @transform_4, window_bounds = array<i64: 1, 4, 128>}]} {
    %cst = arith.constant 0.000000e+00 : f32
    %0 = vector.broadcast %cst : f32 to vector<8x256xf32>
    %c0 = arith.constant 0 : index
    %c0_0 = arith.constant 0 : index
    %c0_1 = arith.constant 0 : index
    %1 = vector.load %arg1[%c0, %c0_0, %c0_1] : memref<1x12x128xf32, #tpu.memory_space<vmem>>, vector<1x8x128xf32>
    %2 = vector.shape_cast %1 : vector<1x8x128xf32> to vector<8x128xf32>
    %3 = arith.truncf %2 : vector<8x128xf32> to vector<8x128xbf16>
    %c0_2 = arith.constant 0 : index
    %c0_3 = arith.constant 0 : index
    %c0_4 = arith.constant 0 : index
    %4 = vector.load %arg2[%c0_2, %c0_3, %c0_4] : memref<5x128x256xbf16, #tpu.memory_space<vmem>>, vector<1x128x256xbf16>
    %5 = vector.shape_cast %4 : vector<1x128x256xbf16> to vector<128x256xbf16>
    %cst_5 = arith.constant dense<0.000000e+00> : vector<8x256xf32>
    %6 = tpu.matmul %3, %5, %cst_5 {dimension_numbers = #tpu.dot_dimension_numbers<[1], [0], [0], [1], [0, 0, 1, 1], [], []>} : vector<8x128xbf16>, vector<128x256xbf16>, vector<8x256xf32> -> vector<8x256xf32>
    %7 = arith.addf %0, %6 : vector<8x256xf32>
    %c0_6 = arith.constant 0 : index
    %c1 = arith.constant 1 : index
    %c0_7 = arith.constant 0 : index
    %8 = vector.load %arg1[%c0_6, %c1, %c0_7] : memref<1x12x128xf32, #tpu.memory_space<vmem>>, vector<1x8x128xf32>
    %9 = vector.shape_cast %8 : vector<1x8x128xf32> to vector<8x128xf32>
    %10 = arith.truncf %9 : vector<8x128xf32> to vector<8x128xbf16>
    %c1_8 = arith.constant 1 : index
    %c0_9 = arith.constant 0 : index
    %c0_10 = arith.constant 0 : index
    %11 = vector.load %arg2[%c1_8, %c0_9, %c0_10] : memref<5x128x256xbf16, #tpu.memory_space<vmem>>, vector<1x128x256xbf16>
    %12 = vector.shape_cast %11 : vector<1x128x256xbf16> to vector<128x256xbf16>
    %cst_11 = arith.constant dense<0.000000e+00> : vector<8x256xf32>
    %13 = tpu.matmul %10, %12, %cst_11 {dimension_numbers = #tpu.dot_dimension_numbers<[1], [0], [0], [1], [0, 0, 1, 1], [], []>} : vector<8x128xbf16>, vector<128x256xbf16>, vector<8x256xf32> -> vector<8x256xf32>
    %14 = arith.addf %7, %13 : vector<8x256xf32>
    %c0_12 = arith.constant 0 : index
    %c2 = arith.constant 2 : index
    %c0_13 = arith.constant 0 : index
    %15 = vector.load %arg1[%c0_12, %c2, %c0_13] : memref<1x12x128xf32, #tpu.memory_space<vmem>>, vector<1x8x128xf32>
    %16 = vector.shape_cast %15 : vector<1x8x128xf32> to vector<8x128xf32>
    %17 = arith.truncf %16 : vector<8x128xf32> to vector<8x128xbf16>
    %c2_14 = arith.constant 2 : index
    %c0_15 = arith.constant 0 : index
    %c0_16 = arith.constant 0 : index
    %18 = vector.load %arg2[%c2_14, %c0_15, %c0_16] : memref<5x128x256xbf16, #tpu.memory_space<vmem>>, vector<1x128x256xbf16>
    %19 = vector.shape_cast %18 : vector<1x128x256xbf16> to vector<128x256xbf16>
    %cst_17 = arith.constant dense<0.000000e+00> : vector<8x256xf32>
    %20 = tpu.matmul %17, %19, %cst_17 {dimension_numbers = #tpu.dot_dimension_numbers<[1], [0], [0], [1], [0, 0, 1, 1], [], []>} : vector<8x128xbf16>, vector<128x256xbf16>, vector<8x256xf32> -> vector<8x256xf32>
    %21 = arith.addf %14, %20 : vector<8x256xf32>
    %c0_18 = arith.constant 0 : index
    %c3 = arith.constant 3 : index
    %c0_19 = arith.constant 0 : index
    %22 = vector.load %arg1[%c0_18, %c3, %c0_19] : memref<1x12x128xf32, #tpu.memory_space<vmem>>, vector<1x8x128xf32>
    %23 = vector.shape_cast %22 : vector<1x8x128xf32> to vector<8x128xf32>
    %24 = arith.truncf %23 : vector<8x128xf32> to vector<8x128xbf16>
    %c3_20 = arith.constant 3 : index
    %c0_21 = arith.constant 0 : index
    %c0_22 = arith.constant 0 : index
    %25 = vector.load %arg2[%c3_20, %c0_21, %c0_22] : memref<5x128x256xbf16, #tpu.memory_space<vmem>>, vector<1x128x256xbf16>
    %26 = vector.shape_cast %25 : vector<1x128x256xbf16> to vector<128x256xbf16>
    %cst_23 = arith.constant dense<0.000000e+00> : vector<8x256xf32>
    %27 = tpu.matmul %24, %26, %cst_23 {dimension_numbers = #tpu.dot_dimension_numbers<[1], [0], [0], [1], [0, 0, 1, 1], [], []>} : vector<8x128xbf16>, vector<128x256xbf16>, vector<8x256xf32> -> vector<8x256xf32>
    %28 = arith.addf %21, %27 : vector<8x256xf32>
    %c0_24 = arith.constant 0 : index
    %c4 = arith.constant 4 : index
    %c0_25 = arith.constant 0 : index
    %29 = vector.load %arg1[%c0_24, %c4, %c0_25] : memref<1x12x128xf32, #tpu.memory_space<vmem>>, vector<1x8x128xf32>
    %30 = vector.shape_cast %29 : vector<1x8x128xf32> to vector<8x128xf32>
    %31 = arith.truncf %30 : vector<8x128xf32> to vector<8x128xbf16>
    %c4_26 = arith.constant 4 : index
    %c0_27 = arith.constant 0 : index
    %c0_28 = arith.constant 0 : index
    %32 = vector.load %arg2[%c4_26, %c0_27, %c0_28] : memref<5x128x256xbf16, #tpu.memory_space<vmem>>, vector<1x128x256xbf16>
    %33 = vector.shape_cast %32 : vector<1x128x256xbf16> to vector<128x256xbf16>
    %cst_29 = arith.constant dense<0.000000e+00> : vector<8x256xf32>
    %34 = tpu.matmul %31, %33, %cst_29 {dimension_numbers = #tpu.dot_dimension_numbers<[1], [0], [0], [1], [0, 0, 1, 1], [], []>} : vector<8x128xbf16>, vector<128x256xbf16>, vector<8x256xf32> -> vector<8x256xf32>
    %35 = arith.addf %28, %34 : vector<8x256xf32>
    %c0_30 = arith.constant 0 : index
    %c0_31 = arith.constant 0 : index
    %36 = vector.load %arg3[%c0_30, %c0_31] : memref<1x256xf32, #tpu.memory_space<vmem>>, vector<1x256xf32>
    %37 = vector.broadcast %36 : vector<1x256xf32> to vector<8x256xf32>
    %38 = arith.addf %35, %37 : vector<8x256xf32>
    %c0_32 = arith.constant 0 : index
    %c0_33 = arith.constant 0 : index
    %39 = vector.load %arg4[%c0_32, %c0_33] : memref<8x8xf32, #tpu.memory_space<vmem>>, vector<8x8xf32>
    %cst_34 = arith.constant dense<0.000000e+00> : vector<8x256xf32>
    %40 = tpu.matmul %39, %38, %cst_34 {dimension_numbers = #tpu.dot_dimension_numbers<[1], [0], [0], [1], [0, 0, 1, 1], [], []>} : vector<8x8xf32>, vector<8x256xf32>, vector<8x256xf32> -> vector<8x256xf32>
    %41 = vector.extract_strided_slice %40 {offsets = [0, 0], sizes = [4, 256], strides = [1, 1]} : vector<8x256xf32> to vector<4x256xf32>
    %42 = vector.extract_strided_slice %40 {offsets = [4, 0], sizes = [4, 256], strides = [1, 1]} : vector<8x256xf32> to vector<4x256xf32>
    %43 = arith.maximumf %41, %42 : vector<4x256xf32>
    %44 = vector.extract_strided_slice %43 {offsets = [0, 0], sizes = [4, 128], strides = [1, 1]} : vector<4x256xf32> to vector<4x128xf32>
    %45 = vector.extract_strided_slice %43 {offsets = [0, 128], sizes = [4, 128], strides = [1, 1]} : vector<4x256xf32> to vector<4x128xf32>
    %46 = arith.maximumf %44, %45 : vector<4x128xf32>
    %cst_35 = arith.constant 0.000000e+00 : f32
    %47 = vector.broadcast %cst_35 : f32 to vector<4x128xf32>
    %48 = arith.maximumf %46, %47 : vector<4x128xf32>
    %c0_36 = arith.constant 0 : index
    %c0_37 = arith.constant 0 : index
    %c0_38 = arith.constant 0 : index
    %49 = vector.load %arg5[%c0_36, %c0_37, %c0_38] : memref<1x4x128xf32, #tpu.memory_space<vmem>>, vector<1x4x128xf32>
    %50 = vector.shape_cast %49 : vector<1x4x128xf32> to vector<4x128xf32>
    %51 = vector.shape_cast %48 : vector<4x128xf32> to vector<1x4x128xf32>
    tpu.vector_store %arg5[%c0_36, %c0_37, %c0_38], %51 {strides = array<i32>} : memref<1x4x128xf32, #tpu.memory_space<vmem>>, vector<1x4x128xf32>,
    return
  }
  func.func @transform_0(%arg0: i32) -> (i32, i32, i32) {
    %c0_i32 = arith.constant 0 : i32
    %c0_i32_0 = arith.constant 0 : i32
    %c0_i32_1 = arith.constant 0 : i32
    return %arg0, %c0_i32, %c0_i32_0 : i32, i32, i32
  }
  func.func @transform_1(%arg0: i32) -> (i32, i32, i32) {
    %c0_i32 = arith.constant 0 : i32
    %c0_i32_0 = arith.constant 0 : i32
    %c0_i32_1 = arith.constant 0 : i32
    %c0_i32_2 = arith.constant 0 : i32
    return %c0_i32, %c0_i32_0, %c0_i32_1 : i32, i32, i32
  }
  func.func @transform_2(%arg0: i32) -> (i32, i32) {
    %c0_i32 = arith.constant 0 : i32
    %c0_i32_0 = arith.constant 0 : i32
    %c0_i32_1 = arith.constant 0 : i32
    return %c0_i32, %c0_i32_0 : i32, i32
  }
  func.func @transform_3(%arg0: i32) -> (i32, i32) {
    %c0_i32 = arith.constant 0 : i32
    %c0_i32_0 = arith.constant 0 : i32
    %c0_i32_1 = arith.constant 0 : i32
    return %c0_i32, %c0_i32_0 : i32, i32
  }
  func.func @transform_4(%arg0: i32) -> (i32, i32, i32) {
    %c0_i32 = arith.constant 0 : i32
    %c0_i32_0 = arith.constant 0 : i32
    %c0_i32_1 = arith.constant 0 : i32
    return %arg0, %c0_i32, %c0_i32_0 : i32, i32, i32
  }
}

module attributes {stable_mosaic.version = 11 : i64} {
  func.func @_conv1_pool_relu_kernel(%arg0: i32, %arg1: memref<1x28x28xf32, #tpu.memory_space<vmem>>, %arg2: memref<25x24x256xbf16, #tpu.memory_space<vmem>>, %arg3: memref<1x256xf32, #tpu.memory_space<vmem>>, %arg4: memref<24x24xf32, #tpu.memory_space<vmem>>, %arg5: memref<1x12x128xf32, #tpu.memory_space<vmem>>) attributes {dimension_semantics = [#tpu.dimension_semantics<parallel>], iteration_bounds = array<i64: 2>, scalar_prefetch = 0 : i64, scratch_operands = 0 : i64, tpu.core_type = #tpu.core_type<tc>, window_params = [{transform_indices = @transform_0, window_bounds = array<i64: 1, 28, 28>}, {pipeline_mode = #tpu.pipeline_mode<synchronous>, transform_indices = @transform_1, window_bounds = array<i64: 25, 24, 256>}, {pipeline_mode = #tpu.pipeline_mode<synchronous>, transform_indices = @transform_2, window_bounds = array<i64: 1, 256>}, {pipeline_mode = #tpu.pipeline_mode<synchronous>, transform_indices = @transform_3, window_bounds = array<i64: 24, 24>}, {transform_indices = @transform_4, window_bounds = array<i64: 1, 12, 128>}]} {
    %cst = arith.constant 0.000000e+00 : f32
    %0 = vector.broadcast %cst : f32 to vector<24x256xf32>
    %c0 = arith.constant 0 : index
    %c0_0 = arith.constant 0 : index
    %c0_1 = arith.constant 0 : index
    %1 = vector.load %arg1[%c0, %c0_0, %c0_1] : memref<1x28x28xf32, #tpu.memory_space<vmem>>, vector<1x24x24xf32>
    %2 = vector.shape_cast %1 : vector<1x24x24xf32> to vector<24x24xf32>
    %3 = arith.truncf %2 : vector<24x24xf32> to vector<24x24xbf16>
    %c0_2 = arith.constant 0 : index
    %c0_3 = arith.constant 0 : index
    %c0_4 = arith.constant 0 : index
    %4 = vector.load %arg2[%c0_2, %c0_3, %c0_4] : memref<25x24x256xbf16, #tpu.memory_space<vmem>>, vector<1x24x256xbf16>
    %5 = vector.shape_cast %4 : vector<1x24x256xbf16> to vector<24x256xbf16>
    %cst_5 = arith.constant dense<0.000000e+00> : vector<24x256xf32>
    %6 = tpu.matmul %3, %5, %cst_5 {dimension_numbers = #tpu.dot_dimension_numbers<[1], [0], [0], [1], [0, 0, 1, 1], [], []>} : vector<24x24xbf16>, vector<24x256xbf16>, vector<24x256xf32> -> vector<24x256xf32>
    %7 = arith.addf %0, %6 : vector<24x256xf32>
    %c0_6 = arith.constant 0 : index
    %c0_7 = arith.constant 0 : index
    %c1 = arith.constant 1 : index
    %8 = vector.load %arg1[%c0_6, %c0_7, %c1] : memref<1x28x28xf32, #tpu.memory_space<vmem>>, vector<1x24x24xf32>
    %9 = vector.shape_cast %8 : vector<1x24x24xf32> to vector<24x24xf32>
    %10 = arith.truncf %9 : vector<24x24xf32> to vector<24x24xbf16>
    %c1_8 = arith.constant 1 : index
    %c0_9 = arith.constant 0 : index
    %c0_10 = arith.constant 0 : index
    %11 = vector.load %arg2[%c1_8, %c0_9, %c0_10] : memref<25x24x256xbf16, #tpu.memory_space<vmem>>, vector<1x24x256xbf16>
    %12 = vector.shape_cast %11 : vector<1x24x256xbf16> to vector<24x256xbf16>
    %cst_11 = arith.constant dense<0.000000e+00> : vector<24x256xf32>
    %13 = tpu.matmul %10, %12, %cst_11 {dimension_numbers = #tpu.dot_dimension_numbers<[1], [0], [0], [1], [0, 0, 1, 1], [], []>} : vector<24x24xbf16>, vector<24x256xbf16>, vector<24x256xf32> -> vector<24x256xf32>
    %14 = arith.addf %7, %13 : vector<24x256xf32>
    %c0_12 = arith.constant 0 : index
    %c0_13 = arith.constant 0 : index
    %c2 = arith.constant 2 : index
    %15 = vector.load %arg1[%c0_12, %c0_13, %c2] : memref<1x28x28xf32, #tpu.memory_space<vmem>>, vector<1x24x24xf32>
    %16 = vector.shape_cast %15 : vector<1x24x24xf32> to vector<24x24xf32>
    %17 = arith.truncf %16 : vector<24x24xf32> to vector<24x24xbf16>
    %c2_14 = arith.constant 2 : index
    %c0_15 = arith.constant 0 : index
    %c0_16 = arith.constant 0 : index
    %18 = vector.load %arg2[%c2_14, %c0_15, %c0_16] : memref<25x24x256xbf16, #tpu.memory_space<vmem>>, vector<1x24x256xbf16>
    %19 = vector.shape_cast %18 : vector<1x24x256xbf16> to vector<24x256xbf16>
    %cst_17 = arith.constant dense<0.000000e+00> : vector<24x256xf32>
    %20 = tpu.matmul %17, %19, %cst_17 {dimension_numbers = #tpu.dot_dimension_numbers<[1], [0], [0], [1], [0, 0, 1, 1], [], []>} : vector<24x24xbf16>, vector<24x256xbf16>, vector<24x256xf32> -> vector<24x256xf32>
    %21 = arith.addf %14, %20 : vector<24x256xf32>
    %c0_18 = arith.constant 0 : index
    %c0_19 = arith.constant 0 : index
    %c3 = arith.constant 3 : index
    %22 = vector.load %arg1[%c0_18, %c0_19, %c3] : memref<1x28x28xf32, #tpu.memory_space<vmem>>, vector<1x24x24xf32>
    %23 = vector.shape_cast %22 : vector<1x24x24xf32> to vector<24x24xf32>
    %24 = arith.truncf %23 : vector<24x24xf32> to vector<24x24xbf16>
    %c3_20 = arith.constant 3 : index
    %c0_21 = arith.constant 0 : index
    %c0_22 = arith.constant 0 : index
    %25 = vector.load %arg2[%c3_20, %c0_21, %c0_22] : memref<25x24x256xbf16, #tpu.memory_space<vmem>>, vector<1x24x256xbf16>
    %26 = vector.shape_cast %25 : vector<1x24x256xbf16> to vector<24x256xbf16>
    %cst_23 = arith.constant dense<0.000000e+00> : vector<24x256xf32>
    %27 = tpu.matmul %24, %26, %cst_23 {dimension_numbers = #tpu.dot_dimension_numbers<[1], [0], [0], [1], [0, 0, 1, 1], [], []>} : vector<24x24xbf16>, vector<24x256xbf16>, vector<24x256xf32> -> vector<24x256xf32>
    %28 = arith.addf %21, %27 : vector<24x256xf32>
    %c0_24 = arith.constant 0 : index
    %c0_25 = arith.constant 0 : index
    %c4 = arith.constant 4 : index
    %29 = vector.load %arg1[%c0_24, %c0_25, %c4] : memref<1x28x28xf32, #tpu.memory_space<vmem>>, vector<1x24x24xf32>
    %30 = vector.shape_cast %29 : vector<1x24x24xf32> to vector<24x24xf32>
    %31 = arith.truncf %30 : vector<24x24xf32> to vector<24x24xbf16>
    %c4_26 = arith.constant 4 : index
    %c0_27 = arith.constant 0 : index
    %c0_28 = arith.constant 0 : index
    %32 = vector.load %arg2[%c4_26, %c0_27, %c0_28] : memref<25x24x256xbf16, #tpu.memory_space<vmem>>, vector<1x24x256xbf16>
    %33 = vector.shape_cast %32 : vector<1x24x256xbf16> to vector<24x256xbf16>
    %cst_29 = arith.constant dense<0.000000e+00> : vector<24x256xf32>
    %34 = tpu.matmul %31, %33, %cst_29 {dimension_numbers = #tpu.dot_dimension_numbers<[1], [0], [0], [1], [0, 0, 1, 1], [], []>} : vector<24x24xbf16>, vector<24x256xbf16>, vector<24x256xf32> -> vector<24x256xf32>
    %35 = arith.addf %28, %34 : vector<24x256xf32>
    %c0_30 = arith.constant 0 : index
    %c1_31 = arith.constant 1 : index
    %c0_32 = arith.constant 0 : index
    %36 = vector.load %arg1[%c0_30, %c1_31, %c0_32] : memref<1x28x28xf32, #tpu.memory_space<vmem>>, vector<1x24x24xf32>
    %37 = vector.shape_cast %36 : vector<1x24x24xf32> to vector<24x24xf32>
    %38 = arith.truncf %37 : vector<24x24xf32> to vector<24x24xbf16>
    %c5 = arith.constant 5 : index
    %c0_33 = arith.constant 0 : index
    %c0_34 = arith.constant 0 : index
    %39 = vector.load %arg2[%c5, %c0_33, %c0_34] : memref<25x24x256xbf16, #tpu.memory_space<vmem>>, vector<1x24x256xbf16>
    %40 = vector.shape_cast %39 : vector<1x24x256xbf16> to vector<24x256xbf16>
    %cst_35 = arith.constant dense<0.000000e+00> : vector<24x256xf32>
    %41 = tpu.matmul %38, %40, %cst_35 {dimension_numbers = #tpu.dot_dimension_numbers<[1], [0], [0], [1], [0, 0, 1, 1], [], []>} : vector<24x24xbf16>, vector<24x256xbf16>, vector<24x256xf32> -> vector<24x256xf32>
    %42 = arith.addf %35, %41 : vector<24x256xf32>
    %c0_36 = arith.constant 0 : index
    %c1_37 = arith.constant 1 : index
    %c1_38 = arith.constant 1 : index
    %43 = vector.load %arg1[%c0_36, %c1_37, %c1_38] : memref<1x28x28xf32, #tpu.memory_space<vmem>>, vector<1x24x24xf32>
    %44 = vector.shape_cast %43 : vector<1x24x24xf32> to vector<24x24xf32>
    %45 = arith.truncf %44 : vector<24x24xf32> to vector<24x24xbf16>
    %c6 = arith.constant 6 : index
    %c0_39 = arith.constant 0 : index
    %c0_40 = arith.constant 0 : index
    %46 = vector.load %arg2[%c6, %c0_39, %c0_40] : memref<25x24x256xbf16, #tpu.memory_space<vmem>>, vector<1x24x256xbf16>
    %47 = vector.shape_cast %46 : vector<1x24x256xbf16> to vector<24x256xbf16>
    %cst_41 = arith.constant dense<0.000000e+00> : vector<24x256xf32>
    %48 = tpu.matmul %45, %47, %cst_41 {dimension_numbers = #tpu.dot_dimension_numbers<[1], [0], [0], [1], [0, 0, 1, 1], [], []>} : vector<24x24xbf16>, vector<24x256xbf16>, vector<24x256xf32> -> vector<24x256xf32>
    %49 = arith.addf %42, %48 : vector<24x256xf32>
    %c0_42 = arith.constant 0 : index
    %c1_43 = arith.constant 1 : index
    %c2_44 = arith.constant 2 : index
    %50 = vector.load %arg1[%c0_42, %c1_43, %c2_44] : memref<1x28x28xf32, #tpu.memory_space<vmem>>, vector<1x24x24xf32>
    %51 = vector.shape_cast %50 : vector<1x24x24xf32> to vector<24x24xf32>
    %52 = arith.truncf %51 : vector<24x24xf32> to vector<24x24xbf16>
    %c7 = arith.constant 7 : index
    %c0_45 = arith.constant 0 : index
    %c0_46 = arith.constant 0 : index
    %53 = vector.load %arg2[%c7, %c0_45, %c0_46] : memref<25x24x256xbf16, #tpu.memory_space<vmem>>, vector<1x24x256xbf16>
    %54 = vector.shape_cast %53 : vector<1x24x256xbf16> to vector<24x256xbf16>
    %cst_47 = arith.constant dense<0.000000e+00> : vector<24x256xf32>
    %55 = tpu.matmul %52, %54, %cst_47 {dimension_numbers = #tpu.dot_dimension_numbers<[1], [0], [0], [1], [0, 0, 1, 1], [], []>} : vector<24x24xbf16>, vector<24x256xbf16>, vector<24x256xf32> -> vector<24x256xf32>
    %56 = arith.addf %49, %55 : vector<24x256xf32>
    %c0_48 = arith.constant 0 : index
    %c1_49 = arith.constant 1 : index
    %c3_50 = arith.constant 3 : index
    %57 = vector.load %arg1[%c0_48, %c1_49, %c3_50] : memref<1x28x28xf32, #tpu.memory_space<vmem>>, vector<1x24x24xf32>
    %58 = vector.shape_cast %57 : vector<1x24x24xf32> to vector<24x24xf32>
    %59 = arith.truncf %58 : vector<24x24xf32> to vector<24x24xbf16>
    %c8 = arith.constant 8 : index
    %c0_51 = arith.constant 0 : index
    %c0_52 = arith.constant 0 : index
    %60 = vector.load %arg2[%c8, %c0_51, %c0_52] : memref<25x24x256xbf16, #tpu.memory_space<vmem>>, vector<1x24x256xbf16>
    %61 = vector.shape_cast %60 : vector<1x24x256xbf16> to vector<24x256xbf16>
    %cst_53 = arith.constant dense<0.000000e+00> : vector<24x256xf32>
    %62 = tpu.matmul %59, %61, %cst_53 {dimension_numbers = #tpu.dot_dimension_numbers<[1], [0], [0], [1], [0, 0, 1, 1], [], []>} : vector<24x24xbf16>, vector<24x256xbf16>, vector<24x256xf32> -> vector<24x256xf32>
    %63 = arith.addf %56, %62 : vector<24x256xf32>
    %c0_54 = arith.constant 0 : index
    %c1_55 = arith.constant 1 : index
    %c4_56 = arith.constant 4 : index
    %64 = vector.load %arg1[%c0_54, %c1_55, %c4_56] : memref<1x28x28xf32, #tpu.memory_space<vmem>>, vector<1x24x24xf32>
    %65 = vector.shape_cast %64 : vector<1x24x24xf32> to vector<24x24xf32>
    %66 = arith.truncf %65 : vector<24x24xf32> to vector<24x24xbf16>
    %c9 = arith.constant 9 : index
    %c0_57 = arith.constant 0 : index
    %c0_58 = arith.constant 0 : index
    %67 = vector.load %arg2[%c9, %c0_57, %c0_58] : memref<25x24x256xbf16, #tpu.memory_space<vmem>>, vector<1x24x256xbf16>
    %68 = vector.shape_cast %67 : vector<1x24x256xbf16> to vector<24x256xbf16>
    %cst_59 = arith.constant dense<0.000000e+00> : vector<24x256xf32>
    %69 = tpu.matmul %66, %68, %cst_59 {dimension_numbers = #tpu.dot_dimension_numbers<[1], [0], [0], [1], [0, 0, 1, 1], [], []>} : vector<24x24xbf16>, vector<24x256xbf16>, vector<24x256xf32> -> vector<24x256xf32>
    %70 = arith.addf %63, %69 : vector<24x256xf32>
    %c0_60 = arith.constant 0 : index
    %c2_61 = arith.constant 2 : index
    %c0_62 = arith.constant 0 : index
    %71 = vector.load %arg1[%c0_60, %c2_61, %c0_62] : memref<1x28x28xf32, #tpu.memory_space<vmem>>, vector<1x24x24xf32>
    %72 = vector.shape_cast %71 : vector<1x24x24xf32> to vector<24x24xf32>
    %73 = arith.truncf %72 : vector<24x24xf32> to vector<24x24xbf16>
    %c10 = arith.constant 10 : index
    %c0_63 = arith.constant 0 : index
    %c0_64 = arith.constant 0 : index
    %74 = vector.load %arg2[%c10, %c0_63, %c0_64] : memref<25x24x256xbf16, #tpu.memory_space<vmem>>, vector<1x24x256xbf16>
    %75 = vector.shape_cast %74 : vector<1x24x256xbf16> to vector<24x256xbf16>
    %cst_65 = arith.constant dense<0.000000e+00> : vector<24x256xf32>
    %76 = tpu.matmul %73, %75, %cst_65 {dimension_numbers = #tpu.dot_dimension_numbers<[1], [0], [0], [1], [0, 0, 1, 1], [], []>} : vector<24x24xbf16>, vector<24x256xbf16>, vector<24x256xf32> -> vector<24x256xf32>
    %77 = arith.addf %70, %76 : vector<24x256xf32>
    %c0_66 = arith.constant 0 : index
    %c2_67 = arith.constant 2 : index
    %c1_68 = arith.constant 1 : index
    %78 = vector.load %arg1[%c0_66, %c2_67, %c1_68] : memref<1x28x28xf32, #tpu.memory_space<vmem>>, vector<1x24x24xf32>
    %79 = vector.shape_cast %78 : vector<1x24x24xf32> to vector<24x24xf32>
    %80 = arith.truncf %79 : vector<24x24xf32> to vector<24x24xbf16>
    %c11 = arith.constant 11 : index
    %c0_69 = arith.constant 0 : index
    %c0_70 = arith.constant 0 : index
    %81 = vector.load %arg2[%c11, %c0_69, %c0_70] : memref<25x24x256xbf16, #tpu.memory_space<vmem>>, vector<1x24x256xbf16>
    %82 = vector.shape_cast %81 : vector<1x24x256xbf16> to vector<24x256xbf16>
    %cst_71 = arith.constant dense<0.000000e+00> : vector<24x256xf32>
    %83 = tpu.matmul %80, %82, %cst_71 {dimension_numbers = #tpu.dot_dimension_numbers<[1], [0], [0], [1], [0, 0, 1, 1], [], []>} : vector<24x24xbf16>, vector<24x256xbf16>, vector<24x256xf32> -> vector<24x256xf32>
    %84 = arith.addf %77, %83 : vector<24x256xf32>
    %c0_72 = arith.constant 0 : index
    %c2_73 = arith.constant 2 : index
    %c2_74 = arith.constant 2 : index
    %85 = vector.load %arg1[%c0_72, %c2_73, %c2_74] : memref<1x28x28xf32, #tpu.memory_space<vmem>>, vector<1x24x24xf32>
    %86 = vector.shape_cast %85 : vector<1x24x24xf32> to vector<24x24xf32>
    %87 = arith.truncf %86 : vector<24x24xf32> to vector<24x24xbf16>
    %c12 = arith.constant 12 : index
    %c0_75 = arith.constant 0 : index
    %c0_76 = arith.constant 0 : index
    %88 = vector.load %arg2[%c12, %c0_75, %c0_76] : memref<25x24x256xbf16, #tpu.memory_space<vmem>>, vector<1x24x256xbf16>
    %89 = vector.shape_cast %88 : vector<1x24x256xbf16> to vector<24x256xbf16>
    %cst_77 = arith.constant dense<0.000000e+00> : vector<24x256xf32>
    %90 = tpu.matmul %87, %89, %cst_77 {dimension_numbers = #tpu.dot_dimension_numbers<[1], [0], [0], [1], [0, 0, 1, 1], [], []>} : vector<24x24xbf16>, vector<24x256xbf16>, vector<24x256xf32> -> vector<24x256xf32>
    %91 = arith.addf %84, %90 : vector<24x256xf32>
    %c0_78 = arith.constant 0 : index
    %c2_79 = arith.constant 2 : index
    %c3_80 = arith.constant 3 : index
    %92 = vector.load %arg1[%c0_78, %c2_79, %c3_80] : memref<1x28x28xf32, #tpu.memory_space<vmem>>, vector<1x24x24xf32>
    %93 = vector.shape_cast %92 : vector<1x24x24xf32> to vector<24x24xf32>
    %94 = arith.truncf %93 : vector<24x24xf32> to vector<24x24xbf16>
    %c13 = arith.constant 13 : index
    %c0_81 = arith.constant 0 : index
    %c0_82 = arith.constant 0 : index
    %95 = vector.load %arg2[%c13, %c0_81, %c0_82] : memref<25x24x256xbf16, #tpu.memory_space<vmem>>, vector<1x24x256xbf16>
    %96 = vector.shape_cast %95 : vector<1x24x256xbf16> to vector<24x256xbf16>
    %cst_83 = arith.constant dense<0.000000e+00> : vector<24x256xf32>
    %97 = tpu.matmul %94, %96, %cst_83 {dimension_numbers = #tpu.dot_dimension_numbers<[1], [0], [0], [1], [0, 0, 1, 1], [], []>} : vector<24x24xbf16>, vector<24x256xbf16>, vector<24x256xf32> -> vector<24x256xf32>
    %98 = arith.addf %91, %97 : vector<24x256xf32>
    %c0_84 = arith.constant 0 : index
    %c2_85 = arith.constant 2 : index
    %c4_86 = arith.constant 4 : index
    %99 = vector.load %arg1[%c0_84, %c2_85, %c4_86] : memref<1x28x28xf32, #tpu.memory_space<vmem>>, vector<1x24x24xf32>
    %100 = vector.shape_cast %99 : vector<1x24x24xf32> to vector<24x24xf32>
    %101 = arith.truncf %100 : vector<24x24xf32> to vector<24x24xbf16>
    %c14 = arith.constant 14 : index
    %c0_87 = arith.constant 0 : index
    %c0_88 = arith.constant 0 : index
    %102 = vector.load %arg2[%c14, %c0_87, %c0_88] : memref<25x24x256xbf16, #tpu.memory_space<vmem>>, vector<1x24x256xbf16>
    %103 = vector.shape_cast %102 : vector<1x24x256xbf16> to vector<24x256xbf16>
    %cst_89 = arith.constant dense<0.000000e+00> : vector<24x256xf32>
    %104 = tpu.matmul %101, %103, %cst_89 {dimension_numbers = #tpu.dot_dimension_numbers<[1], [0], [0], [1], [0, 0, 1, 1], [], []>} : vector<24x24xbf16>, vector<24x256xbf16>, vector<24x256xf32> -> vector<24x256xf32>
    %105 = arith.addf %98, %104 : vector<24x256xf32>
    %c0_90 = arith.constant 0 : index
    %c3_91 = arith.constant 3 : index
    %c0_92 = arith.constant 0 : index
    %106 = vector.load %arg1[%c0_90, %c3_91, %c0_92] : memref<1x28x28xf32, #tpu.memory_space<vmem>>, vector<1x24x24xf32>
    %107 = vector.shape_cast %106 : vector<1x24x24xf32> to vector<24x24xf32>
    %108 = arith.truncf %107 : vector<24x24xf32> to vector<24x24xbf16>
    %c15 = arith.constant 15 : index
    %c0_93 = arith.constant 0 : index
    %c0_94 = arith.constant 0 : index
    %109 = vector.load %arg2[%c15, %c0_93, %c0_94] : memref<25x24x256xbf16, #tpu.memory_space<vmem>>, vector<1x24x256xbf16>
    %110 = vector.shape_cast %109 : vector<1x24x256xbf16> to vector<24x256xbf16>
    %cst_95 = arith.constant dense<0.000000e+00> : vector<24x256xf32>
    %111 = tpu.matmul %108, %110, %cst_95 {dimension_numbers = #tpu.dot_dimension_numbers<[1], [0], [0], [1], [0, 0, 1, 1], [], []>} : vector<24x24xbf16>, vector<24x256xbf16>, vector<24x256xf32> -> vector<24x256xf32>
    %112 = arith.addf %105, %111 : vector<24x256xf32>
    %c0_96 = arith.constant 0 : index
    %c3_97 = arith.constant 3 : index
    %c1_98 = arith.constant 1 : index
    %113 = vector.load %arg1[%c0_96, %c3_97, %c1_98] : memref<1x28x28xf32, #tpu.memory_space<vmem>>, vector<1x24x24xf32>
    %114 = vector.shape_cast %113 : vector<1x24x24xf32> to vector<24x24xf32>
    %115 = arith.truncf %114 : vector<24x24xf32> to vector<24x24xbf16>
    %c16 = arith.constant 16 : index
    %c0_99 = arith.constant 0 : index
    %c0_100 = arith.constant 0 : index
    %116 = vector.load %arg2[%c16, %c0_99, %c0_100] : memref<25x24x256xbf16, #tpu.memory_space<vmem>>, vector<1x24x256xbf16>
    %117 = vector.shape_cast %116 : vector<1x24x256xbf16> to vector<24x256xbf16>
    %cst_101 = arith.constant dense<0.000000e+00> : vector<24x256xf32>
    %118 = tpu.matmul %115, %117, %cst_101 {dimension_numbers = #tpu.dot_dimension_numbers<[1], [0], [0], [1], [0, 0, 1, 1], [], []>} : vector<24x24xbf16>, vector<24x256xbf16>, vector<24x256xf32> -> vector<24x256xf32>
    %119 = arith.addf %112, %118 : vector<24x256xf32>
    %c0_102 = arith.constant 0 : index
    %c3_103 = arith.constant 3 : index
    %c2_104 = arith.constant 2 : index
    %120 = vector.load %arg1[%c0_102, %c3_103, %c2_104] : memref<1x28x28xf32, #tpu.memory_space<vmem>>, vector<1x24x24xf32>
    %121 = vector.shape_cast %120 : vector<1x24x24xf32> to vector<24x24xf32>
    %122 = arith.truncf %121 : vector<24x24xf32> to vector<24x24xbf16>
    %c17 = arith.constant 17 : index
    %c0_105 = arith.constant 0 : index
    %c0_106 = arith.constant 0 : index
    %123 = vector.load %arg2[%c17, %c0_105, %c0_106] : memref<25x24x256xbf16, #tpu.memory_space<vmem>>, vector<1x24x256xbf16>
    %124 = vector.shape_cast %123 : vector<1x24x256xbf16> to vector<24x256xbf16>
    %cst_107 = arith.constant dense<0.000000e+00> : vector<24x256xf32>
    %125 = tpu.matmul %122, %124, %cst_107 {dimension_numbers = #tpu.dot_dimension_numbers<[1], [0], [0], [1], [0, 0, 1, 1], [], []>} : vector<24x24xbf16>, vector<24x256xbf16>, vector<24x256xf32> -> vector<24x256xf32>
    %126 = arith.addf %119, %125 : vector<24x256xf32>
    %c0_108 = arith.constant 0 : index
    %c3_109 = arith.constant 3 : index
    %c3_110 = arith.constant 3 : index
    %127 = vector.load %arg1[%c0_108, %c3_109, %c3_110] : memref<1x28x28xf32, #tpu.memory_space<vmem>>, vector<1x24x24xf32>
    %128 = vector.shape_cast %127 : vector<1x24x24xf32> to vector<24x24xf32>
    %129 = arith.truncf %128 : vector<24x24xf32> to vector<24x24xbf16>
    %c18 = arith.constant 18 : index
    %c0_111 = arith.constant 0 : index
    %c0_112 = arith.constant 0 : index
    %130 = vector.load %arg2[%c18, %c0_111, %c0_112] : memref<25x24x256xbf16, #tpu.memory_space<vmem>>, vector<1x24x256xbf16>
    %131 = vector.shape_cast %130 : vector<1x24x256xbf16> to vector<24x256xbf16>
    %cst_113 = arith.constant dense<0.000000e+00> : vector<24x256xf32>
    %132 = tpu.matmul %129, %131, %cst_113 {dimension_numbers = #tpu.dot_dimension_numbers<[1], [0], [0], [1], [0, 0, 1, 1], [], []>} : vector<24x24xbf16>, vector<24x256xbf16>, vector<24x256xf32> -> vector<24x256xf32>
    %133 = arith.addf %126, %132 : vector<24x256xf32>
    %c0_114 = arith.constant 0 : index
    %c3_115 = arith.constant 3 : index
    %c4_116 = arith.constant 4 : index
    %134 = vector.load %arg1[%c0_114, %c3_115, %c4_116] : memref<1x28x28xf32, #tpu.memory_space<vmem>>, vector<1x24x24xf32>
    %135 = vector.shape_cast %134 : vector<1x24x24xf32> to vector<24x24xf32>
    %136 = arith.truncf %135 : vector<24x24xf32> to vector<24x24xbf16>
    %c19 = arith.constant 19 : index
    %c0_117 = arith.constant 0 : index
    %c0_118 = arith.constant 0 : index
    %137 = vector.load %arg2[%c19, %c0_117, %c0_118] : memref<25x24x256xbf16, #tpu.memory_space<vmem>>, vector<1x24x256xbf16>
    %138 = vector.shape_cast %137 : vector<1x24x256xbf16> to vector<24x256xbf16>
    %cst_119 = arith.constant dense<0.000000e+00> : vector<24x256xf32>
    %139 = tpu.matmul %136, %138, %cst_119 {dimension_numbers = #tpu.dot_dimension_numbers<[1], [0], [0], [1], [0, 0, 1, 1], [], []>} : vector<24x24xbf16>, vector<24x256xbf16>, vector<24x256xf32> -> vector<24x256xf32>
    %140 = arith.addf %133, %139 : vector<24x256xf32>
    %c0_120 = arith.constant 0 : index
    %c4_121 = arith.constant 4 : index
    %c0_122 = arith.constant 0 : index
    %141 = vector.load %arg1[%c0_120, %c4_121, %c0_122] : memref<1x28x28xf32, #tpu.memory_space<vmem>>, vector<1x24x24xf32>
    %142 = vector.shape_cast %141 : vector<1x24x24xf32> to vector<24x24xf32>
    %143 = arith.truncf %142 : vector<24x24xf32> to vector<24x24xbf16>
    %c20 = arith.constant 20 : index
    %c0_123 = arith.constant 0 : index
    %c0_124 = arith.constant 0 : index
    %144 = vector.load %arg2[%c20, %c0_123, %c0_124] : memref<25x24x256xbf16, #tpu.memory_space<vmem>>, vector<1x24x256xbf16>
    %145 = vector.shape_cast %144 : vector<1x24x256xbf16> to vector<24x256xbf16>
    %cst_125 = arith.constant dense<0.000000e+00> : vector<24x256xf32>
    %146 = tpu.matmul %143, %145, %cst_125 {dimension_numbers = #tpu.dot_dimension_numbers<[1], [0], [0], [1], [0, 0, 1, 1], [], []>} : vector<24x24xbf16>, vector<24x256xbf16>, vector<24x256xf32> -> vector<24x256xf32>
    %147 = arith.addf %140, %146 : vector<24x256xf32>
    %c0_126 = arith.constant 0 : index
    %c4_127 = arith.constant 4 : index
    %c1_128 = arith.constant 1 : index
    %148 = vector.load %arg1[%c0_126, %c4_127, %c1_128] : memref<1x28x28xf32, #tpu.memory_space<vmem>>, vector<1x24x24xf32>
    %149 = vector.shape_cast %148 : vector<1x24x24xf32> to vector<24x24xf32>
    %150 = arith.truncf %149 : vector<24x24xf32> to vector<24x24xbf16>
    %c21 = arith.constant 21 : index
    %c0_129 = arith.constant 0 : index
    %c0_130 = arith.constant 0 : index
    %151 = vector.load %arg2[%c21, %c0_129, %c0_130] : memref<25x24x256xbf16, #tpu.memory_space<vmem>>, vector<1x24x256xbf16>
    %152 = vector.shape_cast %151 : vector<1x24x256xbf16> to vector<24x256xbf16>
    %cst_131 = arith.constant dense<0.000000e+00> : vector<24x256xf32>
    %153 = tpu.matmul %150, %152, %cst_131 {dimension_numbers = #tpu.dot_dimension_numbers<[1], [0], [0], [1], [0, 0, 1, 1], [], []>} : vector<24x24xbf16>, vector<24x256xbf16>, vector<24x256xf32> -> vector<24x256xf32>
    %154 = arith.addf %147, %153 : vector<24x256xf32>
    %c0_132 = arith.constant 0 : index
    %c4_133 = arith.constant 4 : index
    %c2_134 = arith.constant 2 : index
    %155 = vector.load %arg1[%c0_132, %c4_133, %c2_134] : memref<1x28x28xf32, #tpu.memory_space<vmem>>, vector<1x24x24xf32>
    %156 = vector.shape_cast %155 : vector<1x24x24xf32> to vector<24x24xf32>
    %157 = arith.truncf %156 : vector<24x24xf32> to vector<24x24xbf16>
    %c22 = arith.constant 22 : index
    %c0_135 = arith.constant 0 : index
    %c0_136 = arith.constant 0 : index
    %158 = vector.load %arg2[%c22, %c0_135, %c0_136] : memref<25x24x256xbf16, #tpu.memory_space<vmem>>, vector<1x24x256xbf16>
    %159 = vector.shape_cast %158 : vector<1x24x256xbf16> to vector<24x256xbf16>
    %cst_137 = arith.constant dense<0.000000e+00> : vector<24x256xf32>
    %160 = tpu.matmul %157, %159, %cst_137 {dimension_numbers = #tpu.dot_dimension_numbers<[1], [0], [0], [1], [0, 0, 1, 1], [], []>} : vector<24x24xbf16>, vector<24x256xbf16>, vector<24x256xf32> -> vector<24x256xf32>
    %161 = arith.addf %154, %160 : vector<24x256xf32>
    %c0_138 = arith.constant 0 : index
    %c4_139 = arith.constant 4 : index
    %c3_140 = arith.constant 3 : index
    %162 = vector.load %arg1[%c0_138, %c4_139, %c3_140] : memref<1x28x28xf32, #tpu.memory_space<vmem>>, vector<1x24x24xf32>
    %163 = vector.shape_cast %162 : vector<1x24x24xf32> to vector<24x24xf32>
    %164 = arith.truncf %163 : vector<24x24xf32> to vector<24x24xbf16>
    %c23 = arith.constant 23 : index
    %c0_141 = arith.constant 0 : index
    %c0_142 = arith.constant 0 : index
    %165 = vector.load %arg2[%c23, %c0_141, %c0_142] : memref<25x24x256xbf16, #tpu.memory_space<vmem>>, vector<1x24x256xbf16>
    %166 = vector.shape_cast %165 : vector<1x24x256xbf16> to vector<24x256xbf16>
    %cst_143 = arith.constant dense<0.000000e+00> : vector<24x256xf32>
    %167 = tpu.matmul %164, %166, %cst_143 {dimension_numbers = #tpu.dot_dimension_numbers<[1], [0], [0], [1], [0, 0, 1, 1], [], []>} : vector<24x24xbf16>, vector<24x256xbf16>, vector<24x256xf32> -> vector<24x256xf32>
    %168 = arith.addf %161, %167 : vector<24x256xf32>
    %c0_144 = arith.constant 0 : index
    %c4_145 = arith.constant 4 : index
    %c4_146 = arith.constant 4 : index
    %169 = vector.load %arg1[%c0_144, %c4_145, %c4_146] : memref<1x28x28xf32, #tpu.memory_space<vmem>>, vector<1x24x24xf32>
    %170 = vector.shape_cast %169 : vector<1x24x24xf32> to vector<24x24xf32>
    %171 = arith.truncf %170 : vector<24x24xf32> to vector<24x24xbf16>
    %c24 = arith.constant 24 : index
    %c0_147 = arith.constant 0 : index
    %c0_148 = arith.constant 0 : index
    %172 = vector.load %arg2[%c24, %c0_147, %c0_148] : memref<25x24x256xbf16, #tpu.memory_space<vmem>>, vector<1x24x256xbf16>
    %173 = vector.shape_cast %172 : vector<1x24x256xbf16> to vector<24x256xbf16>
    %cst_149 = arith.constant dense<0.000000e+00> : vector<24x256xf32>
    %174 = tpu.matmul %171, %173, %cst_149 {dimension_numbers = #tpu.dot_dimension_numbers<[1], [0], [0], [1], [0, 0, 1, 1], [], []>} : vector<24x24xbf16>, vector<24x256xbf16>, vector<24x256xf32> -> vector<24x256xf32>
    %175 = arith.addf %168, %174 : vector<24x256xf32>
    %c0_150 = arith.constant 0 : index
    %c0_151 = arith.constant 0 : index
    %176 = vector.load %arg3[%c0_150, %c0_151] : memref<1x256xf32, #tpu.memory_space<vmem>>, vector<1x256xf32>
    %177 = vector.broadcast %176 : vector<1x256xf32> to vector<24x256xf32>
    %178 = arith.addf %175, %177 : vector<24x256xf32>
    %c0_152 = arith.constant 0 : index
    %c0_153 = arith.constant 0 : index
    %179 = vector.load %arg4[%c0_152, %c0_153] : memref<24x24xf32, #tpu.memory_space<vmem>>, vector<24x24xf32>
    %cst_154 = arith.constant dense<0.000000e+00> : vector<24x256xf32>
    %180 = tpu.matmul %179, %178, %cst_154 {dimension_numbers = #tpu.dot_dimension_numbers<[1], [0], [0], [1], [0, 0, 1, 1], [], []>} : vector<24x24xf32>, vector<24x256xf32>, vector<24x256xf32> -> vector<24x256xf32>
    %181 = vector.extract_strided_slice %180 {offsets = [0, 0], sizes = [12, 256], strides = [1, 1]} : vector<24x256xf32> to vector<12x256xf32>
    %182 = vector.extract_strided_slice %180 {offsets = [12, 0], sizes = [12, 256], strides = [1, 1]} : vector<24x256xf32> to vector<12x256xf32>
    %183 = arith.maximumf %181, %182 : vector<12x256xf32>
    %184 = vector.extract_strided_slice %183 {offsets = [0, 0], sizes = [12, 128], strides = [1, 1]} : vector<12x256xf32> to vector<12x128xf32>
    %185 = vector.extract_strided_slice %183 {offsets = [0, 128], sizes = [12, 128], strides = [1, 1]} : vector<12x256xf32> to vector<12x128xf32>
    %186 = arith.maximumf %184, %185 : vector<12x128xf32>
    %cst_155 = arith.constant 0.000000e+00 : f32
    %187 = vector.broadcast %cst_155 : f32 to vector<12x128xf32>
    %188 = arith.maximumf %186, %187 : vector<12x128xf32>
    %c0_156 = arith.constant 0 : index
    %c0_157 = arith.constant 0 : index
    %c0_158 = arith.constant 0 : index
    %189 = vector.load %arg5[%c0_156, %c0_157, %c0_158] : memref<1x12x128xf32, #tpu.memory_space<vmem>>, vector<1x12x128xf32>
    %190 = vector.shape_cast %189 : vector<1x12x128xf32> to vector<12x128xf32>
    %191 = vector.shape_cast %188 : vector<12x128xf32> to vector<1x12x128xf32>
    tpu.vector_store %arg5[%c0_156, %c0_157, %c0_158], %191 {strides = array<i32>} : memref<1x12x128xf32, #tpu.memory_space<vmem>>, vector<1x12x128xf32>,
    return
  }
  func.func @transform_0(%arg0: i32) -> (i32, i32, i32) {
    %c0_i32 = arith.constant 0 : i32
    %c0_i32_0 = arith.constant 0 : i32
    %c0_i32_1 = arith.constant 0 : i32
    return %arg0, %c0_i32, %c0_i32_0 : i32, i32, i32
  }
  func.func @transform_1(%arg0: i32) -> (i32, i32, i32) {
    %c0_i32 = arith.constant 0 : i32
    %c0_i32_0 = arith.constant 0 : i32
    %c0_i32_1 = arith.constant 0 : i32
    %c0_i32_2 = arith.constant 0 : i32
    return %c0_i32, %c0_i32_0, %c0_i32_1 : i32, i32, i32
  }
  func.func @transform_2(%arg0: i32) -> (i32, i32) {
    %c0_i32 = arith.constant 0 : i32
    %c0_i32_0 = arith.constant 0 : i32
    %c0_i32_1 = arith.constant 0 : i32
    return %c0_i32, %c0_i32_0 : i32, i32
  }
  func.func @transform_3(%arg0: i32) -> (i32, i32) {
    %c0_i32 = arith.constant 0 : i32
    %c0_i32_0 = arith.constant 0 : i32
    %c0_i32_1 = arith.constant 0 : i32
    return %c0_i32, %c0_i32_0 : i32, i32
  }
  func.func @transform_4(%arg0: i32) -> (i32, i32, i32) {
    %c0_i32 = arith.constant 0 : i32
    %c0_i32_0 = arith.constant 0 : i32
    %c0_i32_1 = arith.constant 0 : i32
    return %arg0, %c0_i32, %c0_i32_0 : i32, i32, i32
  }
}

module attributes {stable_mosaic.version = 11 : i64} {
  func.func @_head_kernel(%arg0: memref<2x512xf32, #tpu.memory_space<vmem>>, %arg1: memref<512x128xbf16, #tpu.memory_space<vmem>>, %arg2: memref<1x128xf32, #tpu.memory_space<vmem>>, %arg3: memref<128x10xbf16, #tpu.memory_space<vmem>>, %arg4: memref<1x10xf32, #tpu.memory_space<vmem>>, %arg5: memref<2x10xf32, #tpu.memory_space<vmem>>) attributes {dimension_semantics = [], scalar_prefetch = 0 : i64, scratch_operands = 0 : i64, tpu.core_type = #tpu.core_type<tc>} {
    %c0 = arith.constant 0 : index
    %c0_0 = arith.constant 0 : index
    %0 = vector.load %arg0[%c0, %c0_0] : memref<2x512xf32, #tpu.memory_space<vmem>>, vector<2x512xf32>
    %1 = arith.truncf %0 : vector<2x512xf32> to vector<2x512xbf16>
    %c0_1 = arith.constant 0 : index
    %c0_2 = arith.constant 0 : index
    %2 = vector.load %arg1[%c0_1, %c0_2] : memref<512x128xbf16, #tpu.memory_space<vmem>>, vector<512x128xbf16>
    %cst = arith.constant dense<0.000000e+00> : vector<2x128xf32>
    %3 = tpu.matmul %1, %2, %cst {dimension_numbers = #tpu.dot_dimension_numbers<[1], [0], [0], [1], [0, 0, 1, 1], [], []>} : vector<2x512xbf16>, vector<512x128xbf16>, vector<2x128xf32> -> vector<2x128xf32>
    %c0_3 = arith.constant 0 : index
    %c0_4 = arith.constant 0 : index
    %4 = vector.load %arg2[%c0_3, %c0_4] : memref<1x128xf32, #tpu.memory_space<vmem>>, vector<1x128xf32>
    %5 = vector.broadcast %4 : vector<1x128xf32> to vector<2x128xf32>
    %6 = arith.addf %3, %5 : vector<2x128xf32>
    %cst_5 = arith.constant 0.000000e+00 : f32
    %7 = vector.broadcast %cst_5 : f32 to vector<2x128xf32>
    %8 = arith.maximumf %6, %7 : vector<2x128xf32>
    %9 = arith.truncf %8 : vector<2x128xf32> to vector<2x128xbf16>
    %c0_6 = arith.constant 0 : index
    %c0_7 = arith.constant 0 : index
    %10 = vector.load %arg3[%c0_6, %c0_7] : memref<128x10xbf16, #tpu.memory_space<vmem>>, vector<128x10xbf16>
    %cst_8 = arith.constant dense<0.000000e+00> : vector<2x10xf32>
    %11 = tpu.matmul %9, %10, %cst_8 {dimension_numbers = #tpu.dot_dimension_numbers<[1], [0], [0], [1], [0, 0, 1, 1], [], []>} : vector<2x128xbf16>, vector<128x10xbf16>, vector<2x10xf32> -> vector<2x10xf32>
    %c0_9 = arith.constant 0 : index
    %c0_10 = arith.constant 0 : index
    %12 = vector.load %arg4[%c0_9, %c0_10] : memref<1x10xf32, #tpu.memory_space<vmem>>, vector<1x10xf32>
    %13 = vector.broadcast %12 : vector<1x10xf32> to vector<2x10xf32>
    %14 = arith.addf %11, %13 : vector<2x10xf32>
    %cst_11 = arith.constant dense<0xFF800000> : vector<2xf32>
    %15 = vector.multi_reduction <maximumf>, %14, %cst_11 [1] : vector<2x10xf32> to vector<2xf32>
    %16 = vector.shape_cast %15 : vector<2xf32> to vector<2x1xf32>
    %17 = vector.broadcast %16 : vector<2x1xf32> to vector<2x10xf32>
    %18 = arith.subf %14, %17 : vector<2x10xf32>
    %19 = math.exp %18 : vector<2x10xf32>
    %cst_12 = arith.constant dense<0.000000e+00> : vector<2xf32>
    %20 = vector.multi_reduction <add>, %19, %cst_12 [1] : vector<2x10xf32> to vector<2xf32>
    %21 = vector.shape_cast %20 : vector<2xf32> to vector<2x1xf32>
    %22 = math.log %21 : vector<2x1xf32>
    %23 = vector.broadcast %22 : vector<2x1xf32> to vector<2x10xf32>
    %24 = arith.subf %18, %23 : vector<2x10xf32>
    %c0_13 = arith.constant 0 : index
    %c0_14 = arith.constant 0 : index
    %25 = vector.load %arg5[%c0_13, %c0_14] : memref<2x10xf32, #tpu.memory_space<vmem>>, vector<2x10xf32>
    tpu.vector_store %arg5[%c0_13, %c0_14], %24 {strides = array<i32>} : memref<2x10xf32, #tpu.memory_space<vmem>>, vector<2x10xf32>,
    return
  }
}

</mosaic_0001>

<bundles_post_ra>
// kernel: net_forward.4
= control target key start
LH: loop header
LB: loop body
LE: loop exit
PB: predicated region body
PF: predicated region fallthrough
CT: control target
= control target key end

     0   :  { %s1377_s15 = smov 0   ;;  %s1660_s0 = inlined_call_operand.vmem [shape: f32[2,12,128], index: 0, kind: input, shape index: {}]   ;;  %s1661_s1 = inlined_call_operand.vmem [shape: bf16[5,128,256], index: 1, kind: input, shape index: {}]   ;;  %s1662_s2 = inlined_call_operand.vmem [shape: f32[1,256], index: 2, kind: input, shape index: {}]   ;;  %s1663_s3 = inlined_call_operand.vmem [shape: f32[8,8], index: 3, kind: input, shape index: {}]   ;;  %s1664_s4 = inlined_call_operand.vmem [shape: f32[2,4,128], index: 4, kind: output, shape index: {}]  }
   0x1 LB: > { %s1056_s16 = sadd.s32 4294967295, %s1348_s15   ;;  %p1060_p0 = scmp.ge.s32.totalorder %s1348_s15, 1  ;;  %s1348_s15 = sphi %s1377_s15, %s14_s15  }
   0x2   : > { %p162_p1 = scmp.lt.s32.totalorder %s1348_s15, 3 }
   0x4   : > { %p163_p2 = pnand %p1060_p0, %p162_p1 }
   0x5   : > { %v1222_v0 = vld [vmem:[%s1661_s1 + $0x84] ss:$8 sps:$4 sm:$0xff] (!%p163_p2)   ;;  %v1350_v2 = vmov (!%p163_p2), 0   ;;  %v1226_v3 = vld [vmem:[%s1661_s1 + $0x80] ss:$8 sps:$4 sm:$0xff] (!%p163_p2)   ;;  %p187_p3 = scmp.lt.s32.totalorder (!%p163_p2), %s1056_s16, 1 }
   0x6   : > { %166 = sbr.rel (%p163_p2) target bundleno = 544 (0x220), region = 36  ;;  %v1224_v1 = vld [vmem:[%s1661_s1 + $0x4] ss:$8 sps:$4 sm:$0xff] (!%p163_p2)   ;;  %346 = vmatprep.mubr.bf16.mxu0 (!%p163_p2), %v1350_v2  ;;  %467 = vmatprep.mubr.bf16.mxu1 (!%p163_p2), %v1350_v2  ;;  %v1227_v4 = vld [vmem:[%s1661_s1] ss:$8 sps:$4 sm:$0xff] (!%p163_p2)   ;;  %vm917_vm0 = vcmask (!%p163_p2), 64512  }
   0x7   : > { %314 = vmatprep.subr.bf16.mxu0 (!%p163_p2), %v1222_v0  ;;  %435 = vmatprep.subr.bf16.mxu1 (!%p163_p2), %v1224_v1  ;;  %v1228_v5 = vld [vmem:[%s1661_s1 + $0x94] ss:$8 sps:$4 sm:$0xff] (!%p163_p2)   ;;  %v1232_v7 = vld [vmem:[%s1661_s1 + $0x90] ss:$8 sps:$4 sm:$0xff] (!%p163_p2)   ;;  %v1234_v9 = vld [vmem:[%s1661_s1 + $0xa4] ss:$8 sps:$4 sm:$0xff] (!%p163_p2)  }
   0x8   : > { %315 = vmatpush1.bf16.msra.mxu0 (!%p163_p2), %v1226_v3  ;;  %436 = vmatpush1.bf16.msra.mxu1 (!%p163_p2), %v1227_v4  ;;  %v1230_v6 = vld [vmem:[%s1661_s1 + $0x14] ss:$8 sps:$4 sm:$0xff] (!%p163_p2)   ;;  %v1233_v8 = vld [vmem:[%s1661_s1 + $0x10] ss:$8 sps:$4 sm:$0xff] (!%p163_p2)   ;;  %v1236_v10 = vld [vmem:[%s1661_s1 + $0x24] ss:$8 sps:$4 sm:$0xff] (!%p163_p2)  }
   0x9   : > { %316 = vmatprep.subr.bf16.mxu0 (!%p163_p2), %v1228_v5  ;;  %437 = vmatprep.subr.bf16.mxu1 (!%p163_p2), %v1230_v6  ;;  %v1238_v11 = vld [vmem:[%s1661_s1 + $0xa0] ss:$8 sps:$4 sm:$0xff] (!%p163_p2)   ;;  %v1240_v13 = vld [vmem:[%s1661_s1 + $0xb4] ss:$8 sps:$4 sm:$0xff] (!%p163_p2)   ;;  %v1244_v15 = vld [vmem:[%s1661_s1 + $0xb0] ss:$8 sps:$4 sm:$0xff] (!%p163_p2)  }
   0xa   : > { %v1239_v12 = vld [vmem:[%s1661_s1 + $0x20] ss:$8 sps:$4 sm:$0xff] (!%p163_p2)   ;;  %v1242_v14 = vld [vmem:[%s1661_s1 + $0x34] ss:$8 sps:$4 sm:$0xff] (!%p163_p2)   ;;  %v1245_v16 = vld [vmem:[%s1661_s1 + $0x30] ss:$8 sps:$4 sm:$0xff] (!%p163_p2)  }
   0xb   : > { %v1246_v17 = vld [vmem:[%s1661_s1 + $0xc4] ss:$8 sps:$4 sm:$0xff] (!%p163_p2)   ;;  %v1250_v19 = vld [vmem:[%s1661_s1 + $0xc0] ss:$8 sps:$4 sm:$0xff] (!%p163_p2)   ;;  %v1252_v21 = vld [vmem:[%s1661_s1 + $0xd4] ss:$8 sps:$4 sm:$0xff] (!%p163_p2)  }
   0xc   : > { %317 = vmatpush1.bf16.msra.mxu0 (!%p163_p2), %v1232_v7  ;;  %438 = vmatpush1.bf16.msra.mxu1 (!%p163_p2), %v1233_v8  ;;  %v1248_v18 = vld [vmem:[%s1661_s1 + $0x44] ss:$8 sps:$4 sm:$0xff] (!%p163_p2)   ;;  %v1251_v20 = vld [vmem:[%s1661_s1 + $0x40] ss:$8 sps:$4 sm:$0xff] (!%p163_p2)   ;;  %v1254_v22 = vld [vmem:[%s1661_s1 + $0x54] ss:$8 sps:$4 sm:$0xff] (!%p163_p2)  }
   0xd   : > { %318 = vmatprep.subr.bf16.mxu0 %v1234_v9  ;;  %439 = vmatprep.subr.bf16.mxu1 %v1236_v10  ;;  %s1666_s16 = smov (!%p187_p3, %s1056_s16), 1  ;;  %v1256_v23 = vld [vmem:[%s1661_s1 + $0xd0] ss:$8 sps:$4 sm:$0xff]   ;;  %v1258_v25 = vld [vmem:[%s1661_s1 + $0xe4] ss:$8 sps:$4 sm:$0xff]  }
   0xe   : > { %v1257_v24 = vld [vmem:[%s1661_s1 + $0x50] ss:$8 sps:$4 sm:$0xff]   ;;  %v1260_v26 = vld [vmem:[%s1661_s1 + $0x64] ss:$8 sps:$4 sm:$0xff]   ;;  %s1211_s21 = sshll.u32 %s1666_s16, 4  ;;  %s1063_s20 = sshll.u32 %s1666_s16, 2 }
   0xf   : > { %v1262_v27 = vld [vmem:[%s1661_s1 + $0xe0] ss:$8 sps:$4 sm:$0xff]   ;;  %v1264_v29 = vld [vmem:[%s1661_s1 + $0xf4] ss:$8 sps:$4 sm:$0xff]   ;;  %s1487_s6 = scalar_lea.vmem %s1660_s0, %s1211_s21  ;;  %v1268_v31 = vld [vmem:[%s1661_s1 + $0xf0] ss:$8 sps:$4 sm:$0xff]   ;;  %s195_s23 = scalar_lea.vmem %s1664_s4, %s1063_s20 }
  0x10   : > { %319 = vmatpush1.bf16.msra.mxu0 %v1238_v11  ;;  %440 = vmatpush1.bf16.msra.mxu1 %v1239_v12  ;;  %v1263_v28 = vld [vmem:[%s1661_s1 + $0x60] ss:$8 sps:$4 sm:$0xff]   ;;  %v1266_v30 = vld [vmem:[%s1661_s1 + $0x74] ss:$8 sps:$4 sm:$0xff]   ;;  %v1269_v32 = vld [vmem:[%s1661_s1 + $0x70] ss:$8 sps:$4 sm:$0xff]  }
  0x11   : > { %320 = vmatprep.subr.bf16.mxu0 %v1240_v13  ;;  %441 = vmatprep.subr.bf16.mxu1 %v1242_v14  ;;  %v215_v33 = vld [vmem:[%s1487_s6 + $0x1] sm:$0xff]  ;;  %v1278_v41 = vld [vmem:[%s1661_s1 + $0x114] ss:$8 sps:$4 sm:$0xff]   ;;  %v1276_v43 = vld [vmem:[%s1661_s1 + $0x110] ss:$8 sps:$4 sm:$0xff]  }
  0x12   : > { %v197_v34 = vld [vmem:[%s1487_s6] sm:$0xff]  ;;  %v216_v37 = vpack.c.bf16 %v215_v33, %v215_v33  ;;  %v1281_v42 = vld [vmem:[%s1661_s1 + $0x194] ss:$8 sps:$4 sm:$0xff]   ;;  %v1279_v44 = vld [vmem:[%s1661_s1 + $0x190] ss:$8 sps:$4 sm:$0xff]  }
  0x13   : > { %v1272_v35 = vld [vmem:[%s1661_s1 + $0x104] ss:$8 sps:$4 sm:$0xff]   ;;  %v198_v38 = vpack.c.bf16 %v197_v34, %v197_v34  ;;  %v1270_v39 = vld [vmem:[%s1661_s1 + $0x100] ss:$8 sps:$4 sm:$0xff]   ;;  %v1290_v49 = vld [vmem:[%s1661_s1 + $0x134] ss:$8 sps:$4 sm:$0xff]  }
  0x14   : > { %321 = vmatpush1.bf16.msra.mxu0 %v1244_v15  ;;  %442 = vmatpush1.bf16.msra.mxu1 %v1245_v16  ;;  %v1275_v36 = vld [vmem:[%s1661_s1 + $0x184] ss:$8 sps:$4 sm:$0xff]   ;;  %v1273_v40 = vld [vmem:[%s1661_s1 + $0x180] ss:$8 sps:$4 sm:$0xff]   ;;  %v1293_v50 = vld [vmem:[%s1661_s1 + $0x1b4] ss:$8 sps:$4 sm:$0xff]  }
  0x15   : > { %322 = vmatprep.subr.bf16.mxu0 %v1246_v17  ;;  %443 = vmatprep.subr.bf16.mxu1 %v1248_v18  ;;  %v1284_v45 = vld [vmem:[%s1661_s1 + $0x124] ss:$8 sps:$4 sm:$0xff]   ;;  %v1282_v47 = vld [vmem:[%s1661_s1 + $0x120] ss:$8 sps:$4 sm:$0xff]   ;;  %v1288_v51 = vld [vmem:[%s1661_s1 + $0x130] ss:$8 sps:$4 sm:$0xff]  }
  0x16   : > { %v1287_v46 = vld [vmem:[%s1661_s1 + $0x1a4] ss:$8 sps:$4 sm:$0xff]   ;;  %v1285_v48 = vld [vmem:[%s1661_s1 + $0x1a0] ss:$8 sps:$4 sm:$0xff]   ;;  %v1291_v52 = vld [vmem:[%s1661_s1 + $0x1b0] ss:$8 sps:$4 sm:$0xff]  }
  0x17   : > { %v1296_v53 = vld [vmem:[%s1661_s1 + $0x144] ss:$8 sps:$4 sm:$0xff]   ;;  %v1294_v55 = vld [vmem:[%s1661_s1 + $0x140] ss:$8 sps:$4 sm:$0xff]   ;;  %v1302_v57 = vld [vmem:[%s1661_s1 + $0x154] ss:$8 sps:$4 sm:$0xff]  }
  0x18   : > { %323 = vmatpush1.bf16.msra.mxu0 %v1250_v19  ;;  %444 = vmatpush1.bf16.msra.mxu1 %v1251_v20  ;;  %v1299_v54 = vld [vmem:[%s1661_s1 + $0x1c4] ss:$8 sps:$4 sm:$0xff]   ;;  %v1297_v56 = vld [vmem:[%s1661_s1 + $0x1c0] ss:$8 sps:$4 sm:$0xff]   ;;  %v1305_v58 = vld [vmem:[%s1661_s1 + $0x1d4] ss:$8 sps:$4 sm:$0xff]  }
  0x19   : > { %324 = vmatprep.subr.bf16.mxu0 %v1252_v21  ;;  %445 = vmatprep.subr.bf16.mxu1 %v1254_v22  ;;  %v1300_v59 = vld [vmem:[%s1661_s1 + $0x150] ss:$8 sps:$4 sm:$0xff]   ;;  %v1308_v61 = vld [vmem:[%s1661_s1 + $0x164] ss:$8 sps:$4 sm:$0xff]   ;;  %v1306_v63 = vld [vmem:[%s1661_s1 + $0x160] ss:$8 sps:$4 sm:$0xff]  }
  0x1a   : > { %v1303_v60 = vld [vmem:[%s1661_s1 + $0x1d0] ss:$8 sps:$4 sm:$0xff]   ;;  %v1311_v62 = vld [vmem:[%s1661_s1 + $0x1e4] ss:$8 sps:$4 sm:$0xff]   ;;  %v1309_v0 = vld [vmem:[%s1661_s1 + $0x1e0] ss:$8 sps:$4 sm:$0xff]  }
  0x1b   : > { %v1314_v1 = vld [vmem:[%s1661_s1 + $0x174] ss:$8 sps:$4 sm:$0xff]   ;;  %v1312_v4 = vld [vmem:[%s1661_s1 + $0x170] ss:$8 sps:$4 sm:$0xff]   ;;  %v476_v6 = vld [vmem:[%s1487_s6 + $0x2] sm:$0xff] }
  0x1c   : > { %325 = vmatpush1.bf16.msra.mxu0 %v1256_v23  ;;  %446 = vmatpush1.bf16.msra.mxu1 %v1257_v24  ;;  %v1317_v3 = vld [vmem:[%s1661_s1 + $0x1f4] ss:$8 sps:$4 sm:$0xff]   ;;  %v1315_v5 = vld [vmem:[%s1661_s1 + $0x1f0] ss:$8 sps:$4 sm:$0xff]   ;;  %v618_v7 = vld [vmem:[%s1487_s6 + $0x3] sm:$0xff]  ;;  %v477_v9 = vpack.c.bf16 %v476_v6, %v476_v6 }
  0x1d   : > { %326 = vmatprep.subr.bf16.mxu0 %v1258_v25  ;;  %447 = vmatprep.subr.bf16.mxu1 %v1260_v26  ;;  %v1320_v8 = vld [vmem:[%s1661_s1 + $0x204] ss:$8 sps:$4 sm:$0xff]   ;;  %v619_v10 = vpack.c.bf16 %v618_v7, %v618_v7  ;;  %v1318_v11 = vld [vmem:[%s1661_s1 + $0x200] ss:$8 sps:$4 sm:$0xff]   ;;  %v1323_v12 = vld [vmem:[%s1661_s1 + $0x214] ss:$8 sps:$4 sm:$0xff]  }
  0x1e   : > { %v1321_v13 = vld [vmem:[%s1661_s1 + $0x210] ss:$8 sps:$4 sm:$0xff]   ;;  %v1326_v14 = vld [vmem:[%s1661_s1 + $0x224] ss:$8 sps:$4 sm:$0xff]   ;;  %v1324_v15 = vld [vmem:[%s1661_s1 + $0x220] ss:$8 sps:$4 sm:$0xff]  }
  0x1f   : > { %v1329_v16 = vld [vmem:[%s1661_s1 + $0x234] ss:$8 sps:$4 sm:$0xff]   ;;  %v1332_v17 = vld [vmem:[%s1661_s1 + $0x244] ss:$8 sps:$4 sm:$0xff]   ;;  %v1330_v18 = vld [vmem:[%s1661_s1 + $0x240] ss:$8 sps:$4 sm:$0xff]  }
  0x20   : > { %327 = vmatpush1.bf16.msra.mxu0 %v1262_v27  ;;  %448 = vmatpush1.bf16.msra.mxu1 %v1263_v28  ;;  %v1335_v19 = vld [vmem:[%s1661_s1 + $0x254] ss:$8 sps:$4 sm:$0xff]   ;;  %v1333_v20 = vld [vmem:[%s1661_s1 + $0x250] ss:$8 sps:$4 sm:$0xff]   ;;  %v1338_v21 = vld [vmem:[%s1661_s1 + $0x264] ss:$8 sps:$4 sm:$0xff]  }
  0x21   : > { %328 = vmatprep.subr.bf16.mxu0 %v1264_v29  ;;  %449 = vmatprep.subr.bf16.mxu1 %v1266_v30  ;;  %v1336_v22 = vld [vmem:[%s1661_s1 + $0x260] ss:$8 sps:$4 sm:$0xff]   ;;  %v1341_v23 = vld [vmem:[%s1661_s1 + $0x274] ss:$8 sps:$4 sm:$0xff]   ;;  %v1339_v24 = vld [vmem:[%s1661_s1 + $0x270] ss:$8 sps:$4 sm:$0xff]  }
  0x22   : > { %v760_v25 = vld [vmem:[%s1487_s6 + $0x4] sm:$0xff]  ;;  %v1351_v27 = vmov 0.0  }
  0x23   : > { %v761_v26 = vpack.c.bf16 %v760_v25, %v760_v25 }
  0x24   : > { %329 = vmatpush1.bf16.msra.mxu0 %v1268_v31  ;;  %450 = vmatpush1.bf16.msra.mxu1 %v1269_v32 }
  0x25   : > { %575 = vmatprep.subr.bf16.mxu0 %v1272_v35  ;;  %717 = vmatprep.subr.bf16.mxu1 %v1275_v36 }
  0x27   : > { %347 = vmatmul.mubr.bf16.vlgmr.msra.gmra.mrb[0].mxu0 %v216_v37  ;;  %468 = vmatmul.mubr.bf16.vlgmr.msra.gmra.mrb[0].mxu1 %v198_v38 }
  0x28   : > { %576 = vmatpush1.bf16.msra.mxu0 %v1270_v39  ;;  %718 = vmatpush1.bf16.msra.mxu1 %v1273_v40 }
  0x29   : > { %577 = vmatprep.subr.bf16.mxu0 %v1278_v41  ;;  %719 = vmatprep.subr.bf16.mxu1 %v1281_v42 }
  0x2a   : > { %607 = vmatprep.mubr.bf16.mxu0 %v1350_v2  ;;  %749 = vmatprep.mubr.bf16.mxu1 %v1350_v2 }
  0x2c   : > { %578 = vmatpush1.bf16.msra.mxu0 %v1276_v43  ;;  %720 = vmatpush1.bf16.msra.mxu1 %v1279_v44 }
  0x2d   : > { %579 = vmatprep.subr.bf16.mxu0 %v1284_v45  ;;  %721 = vmatprep.subr.bf16.mxu1 %v1287_v46 }
  0x30   : > { %580 = vmatpush1.bf16.msra.mxu0 %v1282_v47  ;;  %722 = vmatpush1.bf16.msra.mxu1 %v1285_v48 }
  0x31   : > { %581 = vmatprep.subr.bf16.mxu0 %v1290_v49  ;;  %723 = vmatprep.subr.bf16.mxu1 %v1293_v50  ;;  %v904_v50 = vlaneseq }
  0x34   : > { %582 = vmatpush1.bf16.msra.mxu0 %v1288_v51  ;;  %724 = vmatpush1.bf16.msra.mxu1 %v1291_v52  ;;  %v905_v51 = vshrl.u32 %v904_v50, 7 }
  0x35   : > { %583 = vmatprep.subr.bf16.mxu0 %v1296_v53  ;;  %725 = vmatprep.subr.bf16.mxu1 %v1299_v54  ;;  %v902_v53 = vld [vmem:[%s1662_s2] sm:$0x3] }
  0x36   : > { %v910_v52 = vsub.s32 1, %v905_v51  ;;  %v906_v54 = vsub.s32 0, %v905_v51 }
  0x38   : > { %584 = vmatpush1.bf16.msra.mxu0 %v1294_v55  ;;  %726 = vmatpush1.bf16.msra.mxu1 %v1297_v56  ;;  %v911_v56 = vrot.slane %v902_v53, %v910_v52 }
  0x39   : > { %585 = vmatprep.subr.bf16.mxu0 %v1302_v57  ;;  %727 = vmatprep.subr.bf16.mxu1 %v1305_v58  ;;  %v907_v58 = vrot.slane %v902_v53, %v906_v54 }
  0x3c   : > { %586 = vmatpush1.bf16.msra.mxu0 %v1300_v59  ;;  %728 = vmatpush1.bf16.msra.mxu1 %v1303_v60 }
  0x3d   : > { %587 = vmatprep.subr.bf16.mxu0 %v1308_v61  ;;  %729 = vmatprep.subr.bf16.mxu1 %v1311_v62 }
  0x40   : > { %588 = vmatpush1.bf16.msra.mxu0 %v1306_v63  ;;  %730 = vmatpush1.bf16.msra.mxu1 %v1309_v0 }
  0x41   : > { %589 = vmatprep.subr.bf16.mxu0 %v1314_v1  ;;  %731 = vmatprep.subr.bf16.mxu1 %v1317_v3  ;;  %v916_v1 = vld [vmem:[%s1663_s3] sm:$0xff] }
  0x44   : > { %590 = vmatpush1.bf16.msra.mxu0 %v1312_v4  ;;  %732 = vmatpush1.bf16.msra.mxu1 %v1315_v5 }
  0x45   : > { %859 = vmatprep.subr.bf16.mxu0 %v1320_v8 }
  0x47   : > { %608 = vmatmul.mubr.bf16.vlgmr.msra.gmra.mrb[4].mxu0 %v477_v9  ;;  %750 = vmatmul.mubr.bf16.vlgmr.msra.gmra.mrb[4].mxu1 %v619_v10 }
  0x48   : > { %860 = vmatpush1.bf16.msra.mxu0 %v1318_v11  ;;  %891 = vmatprep.mubr.bf16.mxu0 %v1350_v2  ;;  %v1327_v2 = vld [vmem:[%s1661_s1 + $0x230] ss:$8 sps:$4 sm:$0xff]  }
  0x49   : > { %861 = vmatprep.subr.bf16.mxu0 %v1323_v12  ;;  %985 = vmatprep.mubr.f32.mxu1 %v1351_v27 }
  0x4c   : > { %862 = vmatpush1.bf16.msra.mxu0 %v1321_v13 }
  0x4d   : > { %863 = vmatprep.subr.bf16.mxu0 %v1326_v14 }
  0x50   : > { %864 = vmatpush1.bf16.msra.mxu0 %v1324_v15 }
  0x51   : > { %865 = vmatprep.subr.bf16.mxu0 %v1329_v16 }
  0x54   : > { %866 = vmatpush1.bf16.msra.mxu0 %v1327_v2 }
  0x55   : > { %867 = vmatprep.subr.bf16.mxu0 %v1332_v17 }
  0x58   : > { %868 = vmatpush1.bf16.msra.mxu0 %v1330_v18 }
  0x59   : > { %869 = vmatprep.subr.bf16.mxu0 %v1335_v19 }
  0x5c   : > { %870 = vmatpush1.bf16.msra.mxu0 %v1333_v20 }
  0x5d   : > { %871 = vmatprep.subr.bf16.mxu0 %v1338_v21 }
  0x60   : > { %872 = vmatpush1.bf16.msra.mxu0 %v1336_v22 }
  0x61   : > { %873 = vmatprep.subr.bf16.mxu0 %v1341_v23 }
  0x64   : > { %874 = vmatpush1.bf16.msra.mxu0 %v1339_v24 }
  0x67   : > { %892 = vmatmul.mubr.bf16.vlgmr.msra.gmra.mrb[8].mxu0 %v761_v26 }
  0xfa   : > { %v348_v28 = vpop.f32.mrb[0].mxu0  ;;  %v469_v29 = vpop.f32.mrb[0].mxu1 }
  0xfb   : > { %v470_v30 = vadd.f32 %v469_v29, %v348_v28  ;;  %v350_v31 = vpop.f32.mrb[1].mxu0  ;;  %v471_v32 = vpop.f32.mrb[1].mxu1 }
  0xfc   : > { %v472_v33 = vadd.f32 %v471_v32, %v350_v31  ;;  %v352_v34 = vpop.f32.mrb[2].mxu0  ;;  %v473_v35 = vpop.f32.mrb[2].mxu1 }
  0xfd   : > { %v353_v36 = vpop.f32.mrb[3].mxu0  ;;  %v474_v37 = vpop.f32.mrb[3].mxu1 }
 0x11a   : > { %v609_v38 = vpop.f32.mrb[4].mxu0  ;;  %v751_v39 = vpop.f32.mrb[4].mxu1 }
 0x11b   : > { %v616_v40 = vadd.f32 %v609_v38, %v470_v30  ;;  %v611_v41 = vpop.f32.mrb[5].mxu0  ;;  %v753_v42 = vpop.f32.mrb[5].mxu1 }
 0x11c   : > { %v617_v43 = vadd.f32 %v611_v41, %v472_v33  ;;  %v613_v44 = vpop.f32.mrb[6].mxu0  ;;  %v755_v45 = vpop.f32.mrb[6].mxu1 }
 0x11d   : > { %v758_v46 = vadd.f32 %v751_v39, %v616_v40  ;;  %v614_v47 = vpop.f32.mrb[7].mxu0  ;;  %v756_v48 = vpop.f32.mrb[7].mxu1 }
 0x11e   : > { %v759_v49 = vadd.f32 %v753_v42, %v617_v43 }
 0x13a   : > { %v893_v55 = vpop.f32.mrb[8].mxu0 }
 0x13b   : > { %v900_v57 = vadd.f32 %v893_v55, %v758_v46  ;;  %v895_v59 = vpop.f32.mrb[9].mxu0 }
 0x13c   : > { %v901_v60 = vadd.f32 %v895_v59, %v759_v49  ;;  %v897_v61 = vpop.f32.mrb[10].mxu0 }
 0x13d   : > { %v898_v62 = vpop.f32.mrb[11].mxu0  ;;  %v914_v0 = vadd.f32 %v907_v58, %v900_v57 }
 0x13e   : > { %v915_v63 = vadd.f32 %v911_v56, %v901_v60 }
 0x140   : > { %921 = vmatprep.subr.mxu1 %v915_v63 }
 0x141   : > { %922 = vmatpush1.msra.mxu1 %v914_v0 }
 0x142   : > { %1208 = vmatmul.mubr.msk.f32.vlgmr.msra.gmra.mrb[8].mxu1 %vm917_vm0, %v916_v1 }
 0x215   : > { %v987_v3 = vpop.f32.mrb[8].mxu1 }
 0x216   : > { %v994_v4 = vrot.slane %v987_v3, 4  ;;  %v989_v5 = vpop.f32.mrb[9].mxu1 }
 0x217   : > { %v995_v6 = vrot.slane %v989_v5, 4 }
 0x218   : > { %v998_v7 = vmax.f32 %v987_v3, %v994_v4 }
 0x219   : > { %v999_v8 = vmax.f32 %v989_v5, %v995_v6 }
 0x21b   : > { %v1000_v9 = vmax.f32 %v998_v7, %v999_v8 }
 0x21d   : > { %v1001_v10 = vmax.f32 %v1000_v9, 0.0 }
 0x21f   : > { %1002 = vst [vmem:[%s195_s23] sm:$0xf] %v1001_v10 }
 0x220 PF: > { %s14_s15 = sadd.s32 1, %s1348_s15  }
 0x221   : > { %p11_p4 = scmp.ge.s32.totalorder %s14_s15, 4  }
 0x223   :  { %13 = sbr.rel (!%p11_p4) target bundleno = 1 (0x1), region = 70 }

// kernel: net_forward.5
= control target key start
LH: loop header
LB: loop body
LE: loop exit
PB: predicated region body
PF: predicated region fallthrough
CT: control target
= control target key end

     0   :  { %v28_v29 = vlaneseq  ;;  %v721_v35 = vmov 1983009808   ;;  %v722_v37 = vmov 0.0   ;;  %s899_s0 = inlined_call_operand.vmem [shape: f32[2,512], index: 0, kind: input, shape index: {}]   ;;  %s900_s1 = inlined_call_operand.vmem [shape: bf16[512,128], index: 1, kind: input, shape index: {}]   ;;  %s901_s2 = inlined_call_operand.vmem [shape: f32[1,128], index: 2, kind: input, shape index: {}]   ;;  %s902_s3 = inlined_call_operand.vmem [shape: bf16[128,10], index: 3, kind: input, shape index: {}]   ;;  %s903_s4 = inlined_call_operand.vmem [shape: f32[1,10], index: 4, kind: input, shape index: {}]   ;;  %s904_s5 = inlined_call_operand.hbm [shape: f32[2,10], index: 5, kind: output, shape index: {}]  }
   0x1   :  { %v652_v0 = vld [vmem:[%s900_s1 + $0x40] sm:$0xff]   ;;  %v656_v4 = vld [vmem:[%s900_s1 + $0x48] sm:$0xff]   ;;  %v660_v8 = vld [vmem:[%s900_s1 + $0x50] sm:$0xff]   ;;  %v26_v36 = vunpack.c.l.s4 %v721_v35 }
   0x2   :  { %v653_v1 = vld [vmem:[%s900_s1 + $0xc0] sm:$0xff]   ;;  %575 = vmatprep.subr.bf16.mxu0 %v652_v0  ;;  %v657_v5 = vld [vmem:[%s900_s1 + $0xc8] sm:$0xff]   ;;  %v661_v9 = vld [vmem:[%s900_s1 + $0xd0] sm:$0xff]   ;;  %v29_v34 = vshrl.u32 %v28_v29, 7 }
   0x3   :  { %v654_v2 = vld [vmem:[%s900_s1] sm:$0xff]   ;;  %597 = vmatprep.subr.bf16.mxu1 %v653_v1  ;;  %v658_v6 = vld [vmem:[%s900_s1 + $0x8] sm:$0xff]   ;;  %v662_v10 = vld [vmem:[%s900_s1 + $0x10] sm:$0xff]   ;;  %v27_v38 = vunpack.c.0.s8 %v26_v36 }
   0x4   :  { %v655_v3 = vld [vmem:[%s900_s1 + $0x80] sm:$0xff]   ;;  %576 = vmatpush3.bf16.msra.mxu0 %v654_v2  ;;  %v659_v7 = vld [vmem:[%s900_s1 + $0x88] sm:$0xff]   ;;  %v663_v11 = vld [vmem:[%s900_s1 + $0x90] sm:$0xff]  }
   0x5   :  { %598 = vmatpush3.bf16.msra.mxu1 %v655_v3  ;;  %577 = vmatprep.subr.bf16.mxu0 %v656_v4  ;;  %v664_v12 = vld [vmem:[%s900_s1 + $0x58] sm:$0xff]   ;;  %v668_v16 = vld [vmem:[%s900_s1 + $0x60] sm:$0xff]   ;;  %v672_v20 = vld [vmem:[%s900_s1 + $0x68] sm:$0xff]   ;;  %v30_v40 = vsub.s32 %v27_v38, %v29_v34 }
   0x6   :  { %599 = vmatprep.subr.bf16.mxu1 %v657_v5  ;;  %v665_v13 = vld [vmem:[%s900_s1 + $0xd8] sm:$0xff]   ;;  %v669_v17 = vld [vmem:[%s900_s1 + $0xe0] sm:$0xff]   ;;  %v673_v21 = vld [vmem:[%s900_s1 + $0xe8] sm:$0xff]  }
   0x7   :  { %v666_v14 = vld [vmem:[%s900_s1 + $0x18] sm:$0xff]   ;;  %v670_v18 = vld [vmem:[%s900_s1 + $0x20] sm:$0xff]   ;;  %v674_v22 = vld [vmem:[%s900_s1 + $0x28] sm:$0xff]  }
   0x8   :  { %578 = vmatpush3.bf16.msra.mxu0 %v658_v6  ;;  %v667_v15 = vld [vmem:[%s900_s1 + $0x98] sm:$0xff]   ;;  %v671_v19 = vld [vmem:[%s900_s1 + $0xa0] sm:$0xff]   ;;  %v675_v23 = vld [vmem:[%s900_s1 + $0xa8] sm:$0xff]  }
   0x9   :  { %600 = vmatpush3.bf16.msra.mxu1 %v659_v7  ;;  %579 = vmatprep.subr.bf16.mxu0 %v660_v8  ;;  %v676_v24 = vld [vmem:[%s900_s1 + $0x70] sm:$0xff]   ;;  %v680_v28 = vld [vmem:[%s900_s1 + $0x78] sm:$0xff]   ;;  %v22_v33 = vld [vmem:[%s899_s0] sm:$0xff] }
   0xa   :  { %601 = vmatprep.subr.bf16.mxu1 %v661_v9  ;;  %v677_v25 = vld [vmem:[%s900_s1 + $0xf0] sm:$0xff]   ;;  %v681_v30 = vld [vmem:[%s900_s1 + $0xf8] sm:$0xff]   ;;  %v24_v39 = vcombine.high %v22_v33, %v22_v33  ;;  %v31_v41 = vrot.slane %v22_v33, %v30_v40 }
   0xb   :  { %v678_v26 = vld [vmem:[%s900_s1 + $0x30] sm:$0xff]   ;;  %v682_v31 = vld [vmem:[%s900_s1 + $0x38] sm:$0xff]  }
   0xc   :  { %580 = vmatpush3.bf16.msra.mxu0 %v662_v10  ;;  %v679_v27 = vld [vmem:[%s900_s1 + $0xb0] sm:$0xff]   ;;  %v683_v32 = vld [vmem:[%s900_s1 + $0xb8] sm:$0xff]   ;;  %v38_v42 = vrot.slane %v24_v39, %v30_v40 }
   0xd   :  { %602 = vmatpush3.bf16.msra.mxu1 %v663_v11  ;;  %581 = vmatprep.subr.bf16.mxu0 %v664_v12 }
   0xe   :  { %603 = vmatprep.subr.bf16.mxu1 %v665_v13 }
  0x10   :  { %582 = vmatpush3.bf16.msra.mxu0 %v666_v14 }
  0x11   :  { %604 = vmatpush3.bf16.msra.mxu1 %v667_v15  ;;  %583 = vmatprep.subr.bf16.mxu0 %v668_v16 }
  0x12   :  { %605 = vmatprep.subr.bf16.mxu1 %v669_v17 }
  0x14   :  { %584 = vmatpush3.bf16.msra.mxu0 %v670_v18 }
  0x15   :  { %606 = vmatpush3.bf16.msra.mxu1 %v671_v19  ;;  %585 = vmatprep.subr.bf16.mxu0 %v672_v20 }
  0x16   :  { %607 = vmatprep.subr.bf16.mxu1 %v673_v21 }
  0x18   :  { %586 = vmatpush3.bf16.msra.mxu0 %v674_v22 }
  0x19   :  { %608 = vmatpush3.bf16.msra.mxu1 %v675_v23  ;;  %587 = vmatprep.subr.bf16.mxu0 %v676_v24 }
  0x1a   :  { %609 = vmatprep.subr.bf16.mxu1 %v677_v25 }
  0x1c   :  { %588 = vmatpush3.bf16.msra.mxu0 %v678_v26 }
  0x1d   :  { %610 = vmatpush3.bf16.msra.mxu1 %v679_v27  ;;  %589 = vmatprep.subr.bf16.mxu0 %v680_v28 }
  0x1e   :  { %611 = vmatprep.subr.bf16.mxu1 %v681_v30 }
  0x20   :  { %590 = vmatpush3.bf16.msra.mxu0 %v682_v31 }
  0x21   :  { %612 = vmatpush3.bf16.msra.mxu1 %v683_v32  ;;  %628 = vmatprep.subr.bf16.mxu0 %v722_v37 }
  0x22   :  { %10 = vsyncpa [#allocation3], 0  ;;  %v39_v43 = vcombine.high %v31_v41, %v31_v41  ;;  %v40_v44 = vcombine.high %v38_v42, %v38_v42  ;;  %v45_v45 = vpack.c.bf16 %v31_v41, %v31_v41  ;;  %v47_v46 = vpack.c.bf16 %v38_v42, %v38_v42  ;;  %v685_v49 = vld [vmem:[%s902_s3] sm:$0xff]   ;;  %v686_v50 = vld [vmem:[%s902_s3 + $0x8] sm:$0xff]  }
  0x23   :  { %v687_v51 = vld [vmem:[%s902_s3 + $0x10] sm:$0xff]   ;;  %v688_v52 = vld [vmem:[%s902_s3 + $0x18] sm:$0xff]   ;;  %v689_v53 = vld [vmem:[%s902_s3 + $0x20] sm:$0xff]   ;;  %vm723_vm0 = vmmov 0   ;;  %vm505_vm1 = vcmask 74752  }
  0x24   :  { %v46_v47 = vpack.c.bf16 %v39_v43, %v39_v43  ;;  %v48_v48 = vpack.c.bf16 %v40_v44, %v40_v44  ;;  %v690_v54 = vld [vmem:[%s902_s3 + $0x28] sm:$0xff]   ;;  %v691_v55 = vld [vmem:[%s902_s3 + $0x30] sm:$0xff]   ;;  %v692_v56 = vld [vmem:[%s902_s3 + $0x38] sm:$0xff]  }
  0x25   :  { %v533_v59 = vld [vmem:[%s901_s2] ss:$0 sm:$0xff]  ;;  %s724_s2 = smov [#allocation2]  }
  0x26   :  { %344 = vmatprep.mubr.bf16.mxu0 %v46_v47  ;;  %384 = vmatprep.mubr.bf16.mxu1 %v48_v48  ;;  %v566_v8 = vld [vmem:[%s903_s4] ss:$0 sm:$0xff]  ;;  %s525_s4 = sshll.u32 %s724_s2, 4  ;;  %s526_s4 = int_to_ptr.vmem [resolvable:$true] %s525_s4 }
  0x27   :  { %345 = vmatmul.mubr.bf16.vlgmr.msra.gmra.mrb[0].mxu0 %v45_v45  ;;  %385 = vmatmul.mubr.bf16.vlgmr.msra.gmra.mrb[0].mxu1 %v47_v46  ;;  %s697_s26 = scalar_lea.vmem %s526_s4, 32  ;;  %p702_p1 = scmp.lt.s32.totalorder %s526_s4, %s526_s4 }
  0x28   :  { %629 = vmatpush3.bf16.msra.mxu0 %v685_v49  ;;  %644 = vmatprep.mubr.msk.bf16.mxu0 %vm723_vm0, %v722_v37  ;;  %p698_p0 = scmp.ne.s32.totalorder %s526_s4, %s697_s26  ;;  %p703_p2 = scmp.lt.s32.totalorder %s697_s26, %s697_s26 }
  0x29   :  { %630 = vmatprep.subr.bf16.mxu0 %v722_v37 }
  0x2a   :  { %p704_p3 = por %p703_p2, %p702_p1 }
  0x2c   :  { %631 = vmatpush3.bf16.msra.mxu0 %v686_v50  ;;  %p705_p4 = pnand %p704_p3, %p698_p0 }
  0x2d   :  { %632 = vmatprep.subr.bf16.mxu0 %v722_v37 }
  0x30   :  { %633 = vmatpush3.bf16.msra.mxu0 %v687_v51 }
  0x31   :  { %634 = vmatprep.subr.bf16.mxu0 %v722_v37 }
  0x34   :  { %635 = vmatpush3.bf16.msra.mxu0 %v688_v52 }
  0x35   :  { %636 = vmatprep.subr.bf16.mxu0 %v722_v37 }
  0x38   :  { %637 = vmatpush3.bf16.msra.mxu0 %v689_v53 }
  0x39   :  { %638 = vmatprep.subr.bf16.mxu0 %v722_v37 }
  0x3c   :  { %639 = vmatpush3.bf16.msra.mxu0 %v690_v54 }
  0x3d   :  { %640 = vmatprep.subr.bf16.mxu0 %v722_v37 }
  0x40   :  { %641 = vmatpush3.bf16.msra.mxu0 %v691_v55 }
  0x41   :  { %642 = vmatprep.subr.bf16.mxu0 %v722_v37 }
  0x44   :  { %643 = vmatpush3.bf16.msra.mxu0 %v692_v56 }
  0xfa   :  { %v591_v57 = vpop.f32.mrb[0].mxu0  ;;  %v613_v58 = vpop.f32.mrb[0].mxu1 }
  0xfb   :  { %v592_v60 = vpop.f32.mrb[1].mxu0  ;;  %v614_v61 = vpop.f32.mrb[1].mxu1 }
  0xfc   :  { %v593_v62 = vadd.f32 %v592_v60, %v591_v57  ;;  %v615_v63 = vadd.f32 %v614_v61, %v613_v58  ;;  %v594_v0 = vpop.f32.mrb[2].mxu0  ;;  %v616_v1 = vpop.f32.mrb[2].mxu1 }
  0xfd   :  { %v595_v2 = vpop.f32.mrb[3].mxu0  ;;  %v617_v3 = vpop.f32.mrb[3].mxu1 }
  0xfe   :  { %v347_v4 = vadd.f32 %v593_v62, %v533_v59 }
 0x100   :  { %v387_v5 = vadd.f32 %v615_v63, %v347_v4 }
 0x102   :  { %v392_v6 = vmax.f32 %v387_v5, 0.0 }
 0x104   :  { %v393_v7 = vpack.c.bf16 %v392_v6, %v392_v6 }
 0x106   :  { %645 = vmatmul.mubr.bf16.vlgmr.msra.gmra.mrb[4].mxu0 %v393_v7 }
 0x1d9   :  { %v499_v9 = vpop.f32.mrb[4].mxu0 }
 0x1da   :  { %v500_v10 = vadd.f32 %v566_v8, %v499_v9  ;;  %v646_v11 = vpop.f32.mrb[5].mxu0 }
 0x1db   :  { %v502_v12 = vpop.f32.mrb[6].mxu0 }
 0x1dc   :  { %v647_v13 = vpop.f32.mrb[7].mxu0  ;;  %v506_v14 = vsel %vm505_vm1, %v500_v10, -inf }
 0x1dd   :  { %507 = vmax.xlane.f32.xlu0 %v506_v14 }
 0x26a   :  { %v508_v15 = vpop.xlane.xlu0 %507 }
 0x26b   :  { %v509_v16 = vsub.f32 %v500_v10, %v508_v15 }
 0x26d   :  { %v510_v17 = vmul.f32 1.442695, %v509_v16 }
 0x26f   :  { %693 = vpow2.f32 %v510_v17 }
 0x279   :  { %v694_v18 = vpop.eup %693 }
 0x27a   :  { %v512_v19 = vsel %vm505_vm1, %v694_v18, 0.0 }
 0x27b   :  { %513 = vadd.xlane.f32.xlu0 %v512_v19 }
 0x308   :  { %v514_v20 = vpop.xlane.xlu0 %513 }
 0x309   :  { %695 = vlog2.f32 %v514_v20 }
 0x313   :  { %v696_v21 = vpop.eup %695 }
 0x314   :  { %v516_v22 = vmul.f32 0.6931472, %v696_v21 }
 0x316   :  { %v517_v23 = vsub.f32 %v509_v16, %v516_v22 }
 0x318   :  { %518 = vst.msk [vmem:[#allocation2] sm:$0x3] %vm505_vm1, %v517_v23 }
 0x319   :  { %708 = shalt.err (!%p705_p4)
}
 0x31a   :  { %s709_s29 = scalar_lea.hbm %s904_s5, 32 }
 0x31b   :  { %p710_p5 = scmp.ne.s32.totalorder %s904_s5, %s709_s29  ;;  %p713_p6 = scmp.lt.u32.totalorder %s709_s29, %s904_s5 }
 0x31d   :  { %p715_p7 = pnand %p713_p6, %p710_p5 }
 0x31f   :  { %718 = shalt.err (!%p715_p7)
}
 0x320   :  { %528 = dma.vmem_to_hbm [thread:$0]  %s526_s4, 32, %s904_s5, [#allocation3]  }
 0x321   :  { %719 = dma.done.wait [#allocation3], 32  }
 0x322   :  { %720 = vsyncadd [#allocation3], 4294967264 }
 0x323   :  { %532 = vsyncpa [#allocation3], 1 }

// kernel: net_forward.3
= control target key start
LH: loop header
LB: loop body
LE: loop exit
PB: predicated region body
PF: predicated region fallthrough
CT: control target
= control target key end

     0   :  { %9 = vsyncpa [#allocation3], 0  ;;  %s3846_s0 = inlined_call_operand.vmem [shape: f32[2,28,28], index: 0, kind: input, shape index: {}]   ;;  %s3847_s1 = inlined_call_operand.hbm [shape: bf16[25,24,256], index: 1, kind: input, shape index: {}]   ;;  %s3848_s2 = inlined_call_operand.hbm [shape: f32[1,256], index: 2, kind: input, shape index: {}]   ;;  %s3849_s3 = inlined_call_operand.hbm [shape: f32[24,24], index: 3, kind: input, shape index: {}]   ;;  %s3850_s4 = inlined_call_operand.vmem [shape: f32[2,12,128], index: 4, kind: output, shape index: {}]  }
   0x1   :  { %10 = vsyncpa [#allocation5], 0  ;;  %s3373_s15 = smov 0  }
   0x2 LB: > { %s3337_s16 = smov [#allocation4]   ;;  %s3379_s18 = sadd.s32 4294967295, %s3335_s15   ;;  %s3335_s15 = sphi %s3373_s15, %s16_s15  }
   0x3   : > { %s162_s17 = sshll.u32 %s3337_s16, 4  ;;  %p2770_p0 = scmp.ge.s32.totalorder %s3335_s15, 1  ;;  %s163_s17 = int_to_ptr.vmem [resolvable:$true] %s162_s17 }
   0x4   : > { %p136_p1 = scmp.lt.s32.totalorder %s3335_s15, 3  ;;  %p3851_p2 = scmp.eq.s32.totalorder %s3379_s18, 0 }
   0x5   : > { %s3338_s20 = smov [#allocation2]   ;;  %s3339_s23 = smov [#allocation6]  }
   0x6   : > { %p3384_p3 = pnand %p2770_p0, %p136_p1  ;;  %s148_s21 = sshll.u32 %s3338_s20, 4  ;;  %s3396_s21 = int_to_ptr.vmem [resolvable:$true] %s148_s21 }
   0x7   : > { %s172_s24 = sshll.u32 %s3339_s23, 4  ;;  %s3237_s27 = scalar_lea.hbm %s3848_s2, 32  ;;  %s3398_s24 = int_to_ptr.vmem [resolvable:$true] %s172_s24 }
   0x8   : > { %s3853_s19 = scalar_select %p3384_p3, 1, 0 }
   0x9   : > { %p3077_p4 = pneg %p3384_p3  ;;  %p3238_p6 = scmp.ne.s32.totalorder %s3848_s2, %s3237_s27 }
   0xa   : > { %p3244_p10 = scmp.lt.u32.totalorder %s3237_s27, %s3848_s2 }
   0xb   : > { %p3392_p5 = pnand %p3851_p2, %p3077_p4 }
   0xd   : > { %p3408_p7 = pneg %p3392_p5 }
   0xf   : > { %p3240_p8 = pnand %p3408_p7, %p3238_p6 }
  0x11   : > { %p3241_p9 = pneg %p3240_p8 }
  0x13   : > { %p3246_p11 = pnand %p3244_p10, %p3241_p9 }
  0x15   : > { %3249 = shalt.err (!%p3246_p11)
}
  0x16   : > { %s3250_s7 = scalar_lea.vmem %s163_s17, 32  ;;  %p3258_p1 = scmp.lt.s32.totalorder %s163_s17, %s163_s17 }
  0x17   : > { %p3251_p12 = scmp.ne.s32.totalorder %s163_s17, %s3250_s7  ;;  %p3259_p4 = scmp.lt.s32.totalorder %s3250_s7, %s3250_s7 }
  0x19   : > { %p3253_p13 = pnand %p3251_p12, %p3408_p7  ;;  %p3260_p2 = por %p3259_p4, %p3258_p1 }
  0x1b   : > { %p3254_p0 = pneg %p3253_p13 }
  0x1d   : > { %p3261_p3 = pnand %p3260_p2, %p3254_p0 }
  0x1f   : > { %3264 = shalt.err (!%p3261_p3)
}
  0x20   : > { %3083 = dma.hbm_to_vmem [thread:$0]  (!%p3392_p5), %s3848_s2, 32, %s163_s17, [#allocation5]  }
  0x21   : > { %s3265_s12 = scalar_lea.hbm %s3847_s1, 9600 }
  0x22   : > { %p3266_p6 = scmp.ne.s32.totalorder %s3847_s1, %s3265_s12  ;;  %p3272_p2 = scmp.lt.u32.totalorder %s3265_s12, %s3847_s1 }
  0x24   : > { %p3268_p8 = pnand %p3266_p6, %p3408_p7 }
  0x26   : > { %p3269_p9 = pneg %p3268_p8 }
  0x28   : > { %p3274_p3 = pnand %p3272_p2, %p3269_p9 }
  0x2a   : > { %3277 = shalt.err (!%p3274_p3)
}
  0x2b   : > { %s3278_s17 = scalar_lea.vmem %s3396_s21, 9600  ;;  %p3286_p13 = scmp.lt.s32.totalorder %s3396_s21, %s3396_s21 }
  0x2c   : > { %p3279_p10 = scmp.ne.s32.totalorder %s3396_s21, %s3278_s17  ;;  %p3287_p0 = scmp.lt.s32.totalorder %s3278_s17, %s3278_s17 }
  0x2e   : > { %p3281_p11 = pnand %p3279_p10, %p3408_p7  ;;  %p3288_p1 = por %p3287_p0, %p3286_p13 }
  0x30   : > { %p3282_p12 = pneg %p3281_p11 }
  0x32   : > { %p3289_p4 = pnand %p3288_p1, %p3282_p12 }
  0x34   : > { %3292 = shalt.err (!%p3289_p4)
}
  0x35   : > { %s3340_s23 = smov 128   ;;  %s3341_s25 = smov 8  }
  0x36   : > { %3080 = dma.hbm_to_vmem [thread:$0]  (!%p3392_p5), %s3847_s1, 9600, %s3396_s21, [#allocation3], %s3340_s23, %s3340_s23, %s3341_s25  }
  0x37   : > { %s3293_s5 = scalar_lea.hbm %s3849_s3, 384 }
  0x38   : > { %p3294_p6 = scmp.ne.s32.totalorder %s3849_s3, %s3293_s5  ;;  %p3300_p2 = scmp.lt.u32.totalorder %s3293_s5, %s3849_s3 }
  0x3a   : > { %p3296_p8 = pnand %p3294_p6, %p3408_p7 }
  0x3c   : > { %p3297_p9 = pneg %p3296_p8 }
  0x3e   : > { %p3302_p3 = pnand %p3300_p2, %p3297_p9 }
  0x40   : > { %3305 = shalt.err (!%p3302_p3)
}
  0x41   : > { %s3306_s21 = scalar_lea.vmem %s3398_s24, 384  ;;  %p3314_p13 = scmp.lt.s32.totalorder %s3398_s24, %s3398_s24 }
  0x42   : > { %p3307_p10 = scmp.ne.s32.totalorder %s3398_s24, %s3306_s21  ;;  %p3315_p0 = scmp.lt.s32.totalorder %s3306_s21, %s3306_s21 }
  0x44   : > { %p3309_p11 = pnand %p3307_p10, %p3408_p7  ;;  %p3316_p1 = por %p3315_p0, %p3314_p13 }
  0x46   : > { %p3310_p12 = pneg %p3309_p11 }
  0x48   : > { %p3317_p4 = pnand %p3316_p1, %p3310_p12 }
  0x4a   : > { %3320 = shalt.err (!%p3317_p4)
}
  0x4b   : > { %3086 = dma.hbm_to_vmem [thread:$0]  (!%p3392_p5), %s3849_s3, 384, %s3398_s24, [#allocation5], %s3340_s23, %s3340_s23, %s3341_s25  }
  0x4c   : > { %p3856_p6 = scmp.ne.s32.totalorder %s3853_s19, 0 }
  0x4d   : > { %p3857_p8 = scmp.eq.s32.totalorder (!%p3856_p6), %s3379_s18, 0 }
  0x4e   : > { %196 = sbr.rel (%p3856_p6) target bundleno = 874 (0x36a), region = 36 }
  0x55   : > { %3326 = dma.done.wait (%p3857_p8), [#allocation3], 9600   ;;  %p3858_p7 = pmov %p3857_p8 }
  0x57   : > { %3328 = vsyncadd (%p3858_p7), [#allocation3], 4294957696  ;;  %p3859_p9 = pmov %p3858_p7 }
  0x58   : > { %p3860_p2 = pmov %p3858_p7 }
  0x59   : > { %3330 = dma.done.wait (%p3859_p9), [#allocation5], 416  }
  0x5a   : > { %3332 = vsyncadd (%p3860_p2), [#allocation5], 4294966880  ;;  %p230_p3 = scmp.lt.s32.totalorder %s3379_s18, 1  ;;  %v3342_v0 = vmov 0   ;;  %s3343_s12 = smov 126   ;;  %v252_v15 = vld [vmem:[#allocation2 + $0x28] sm:$0xff] }
  0x5b   : > { %320 = vmatprep.mubr.bf16.mxu1 %v3342_v0  ;;  %1410 = vmatprep.mubr.bf16.mxu0 %v3342_v0  ;;  %s3344_s13 = smov 127   ;;  %v3112_v11 = vld [vmem:[#allocation2 + $0x1c] ss:$8 sps:$4 sm:$0xff]   ;;  %v3116_v13 = vld [vmem:[#allocation2 + $0x18] ss:$8 sps:$4 sm:$0xff]   ;;  %vm281_vm0 = vcmask 1043456   ;;  %v2786_v16 = vcombine.high %v252_v15, %v252_v15  ;;  %v2785_v18 = vcombine.low %v252_v15, %v252_v15 }
  0x5c   : > { %s3862_s18 = smov (!%p230_p3, %s3379_s18), 1  ;;  %v3114_v12 = vld [vmem:[#allocation2 + $0x124] ss:$8 sps:$4 sm:$0xff]   ;;  %288 = vmatprep.subr.bf16.mxu1 %v3112_v11  ;;  %v3117_v14 = vld [vmem:[#allocation2 + $0x120] ss:$8 sps:$4 sm:$0xff]   ;;  %v1346_v17 = vld [vmem:[#allocation2 + $0x130] sm:$0xff] }
  0x5d   : > { %s2963_s19 = sshll.u32 %s3862_s18, 5  ;;  %1378 = vmatprep.subr.bf16.mxu0 %v3114_v12  ;;  %289 = vmatpush1.bf16.msra.mxu1 %v3116_v13  ;;  %v2870_v19 = vcombine.high %v1346_v17, %v1346_v17  ;;  %v2869_v20 = vcombine.low %v1346_v17, %v1346_v17  ;;  %v283_v21 = vsel %vm281_vm0, %v2785_v18, 0  ;;  %v3124_v22 = vld [vmem:[#allocation2 + $0x4] ss:$8 sps:$4 sm:$0xff]   ;;  %s3345_s14 = smov 125   ;;  %v248_v40 = vld [vmem:[#allocation2 + $0x10] sm:$0xff] }
  0x5e   : > { %s3490_s30 = scalar_lea.vmem %s3846_s0, %s2963_s19  ;;  %1379 = vmatpush1.bf16.msra.mxu0 %v3117_v14  ;;  %2787 = vmatprep.subr.msk.bf16.mxu1 %vm281_vm0, %v2786_v16  ;;  %v3127_v24 = vld [vmem:[#allocation2 + $0x13c] ss:$8 sps:$4 sm:$0xff]   ;;  %s3346_s16 = smov 124   ;;  %vm274_vm1 = vcmask 195584   ;;  %v1438_v41 = vld [vmem:[#allocation2 + $0x148] sm:$0xff]  ;;  %v2793_v45 = vcombine.high %v248_v40, %v248_v40  ;;  %v2792_v46 = vcombine.low %v248_v40, %v248_v40 }
  0x5f   : > { %v1156_v1 = vld [vmem:[%s3490_s30 + $0x2] sm:$0xff]  ;;  %v1157_v2 = vld [vmem:[%s3490_s30 + $0xa] sm:$0xff]  ;;  %v1158_v6 = vld [vmem:[%s3490_s30 + $0x12] sm:$0xff]  ;;  %2871 = vmatprep.subr.msk.bf16.mxu0 %vm281_vm0, %v2870_v19  ;;  %v1373_v23 = vsel %vm281_vm0, %v2869_v20, 0  ;;  %v2877_v48 = vcombine.high %v1438_v41, %v1438_v41  ;;  %v2876_v49 = vcombine.low %v1438_v41, %v1438_v41  ;;  %s2964_s20 = sshll.u32 %s3862_s18, 4 }
  0x60   : > { %v241_v3 = vld [vmem:[%s3490_s30] sm:$0xff]  ;;  %v3495_v4 = vpack.c.bf16 %v1157_v2, %v1156_v1  ;;  %v242_v5 = vld [vmem:[%s3490_s30 + $0x8] sm:$0xff]  ;;  %v243_v7 = vld [vmem:[%s3490_s30 + $0x10] sm:$0xff]  ;;  %v3504_v9 = vpack.c.bf16 %v1158_v6, %v1158_v6  ;;  %v361_v50 = vsel %vm281_vm0, %v2792_v46, 0  ;;  %s239_s25 = scalar_lea.vmem %s3850_s4, %s2964_s20 }
  0x61   : > { %v3500_v8 = vpack.c.bf16 %v242_v5, %v241_v3  ;;  %v3508_v10 = vpack.c.bf16 %v243_v7, %v243_v7  ;;  %291 = vmatpush1.bf16.msra.mxu1 %v283_v21  ;;  %v1619_v25 = vld [vmem:[%s3490_s30 + $0x3] sm:$0xff]  ;;  %v1620_v26 = vld [vmem:[%s3490_s30 + $0xb] sm:$0xff]  ;;  %v1621_v27 = vld [vmem:[%s3490_s30 + $0x13] sm:$0xff]  ;;  %v1465_v52 = vsel %vm281_vm0, %v2876_v49, 0 }
  0x62   : > { %1347 = vrot.lane.b32.xlu1 %v3495_v4, %s3343_s12  ;;  %1381 = vmatpush1.bf16.msra.mxu0 %v1373_v23  ;;  %v3539_v28 = vpack.c.bf16 %v1621_v27, %v1621_v27  ;;  %v3543_v29 = vpack.c.bf16 %v1620_v26, %v1619_v25  ;;  %v693_v30 = vld [vmem:[%s3490_s30 + $0x1] sm:$0xff]  ;;  %v694_v31 = vld [vmem:[%s3490_s30 + $0x9] sm:$0xff]  ;;  %v695_v33 = vld [vmem:[%s3490_s30 + $0x11] sm:$0xff] }
  0x63   : > { %255 = vrot.lane.b32.xlu0 %v3500_v8, %s3344_s13  ;;  %366 = vmatprep.subr.bf16.mxu1 %v3124_v22  ;;  %v3549_v32 = vpack.c.bf16 %v694_v31, %v693_v30  ;;  %v3556_v34 = vpack.c.bf16 %v695_v33, %v695_v33  ;;  %v2084_v35 = vld [vmem:[%s3490_s30 + $0x14] sm:$0xff]  ;;  %v2082_v36 = vld [vmem:[%s3490_s30 + $0x4] sm:$0xff]  ;;  %v2083_v37 = vld [vmem:[%s3490_s30 + $0xc] sm:$0xff] }
  0x64   : > { %1470 = vmatprep.subr.bf16.mxu0 %v3127_v24  ;;  %v3585_v38 = vpack.c.bf16 %v2084_v35, %v2084_v35  ;;  %v3589_v39 = vpack.c.bf16 %v2083_v37, %v2082_v36  ;;  %v3122_v42 = vld [vmem:[#allocation2] ss:$8 sps:$4 sm:$0xff]   ;;  %v3134_v51 = vld [vmem:[#allocation2 + $0x34] ss:$8 sps:$4 sm:$0xff]   ;;  %v3132_v59 = vld [vmem:[#allocation2 + $0x30] ss:$8 sps:$4 sm:$0xff]  }
  0x65   : > { %v3125_v44 = vld [vmem:[#allocation2 + $0x138] ss:$8 sps:$4 sm:$0xff]   ;;  %v3137_v53 = vld [vmem:[#allocation2 + $0x154] ss:$8 sps:$4 sm:$0xff]   ;;  %v3142_v14 = vld [vmem:[#allocation2 + $0x48] ss:$8 sps:$4 sm:$0xff]  }
  0x66   : > { %1349 = vrot.lane.b32.xlu1 %v3504_v9, %s3343_s12  ;;  %v420_v56 = vld [vmem:[#allocation2 + $0x40] sm:$0xff]  ;;  %v3135_v60 = vld [vmem:[#allocation2 + $0x150] ss:$8 sps:$4 sm:$0xff]   ;;  %v3144_v3 = vld [vmem:[#allocation2 + $0x4c] ss:$8 sps:$4 sm:$0xff]  }
  0x67   : > { %257 = vrot.lane.b32.xlu0 %v3508_v10, %s3344_s13  ;;  %v1530_v58 = vld [vmem:[#allocation2 + $0x160] sm:$0xff]  ;;  %v2800_v61 = vcombine.high %v420_v56, %v420_v56  ;;  %v2799_v62 = vcombine.low %v420_v56, %v420_v56  ;;  %v3147_v6 = vld [vmem:[#allocation2 + $0x16c] ss:$8 sps:$4 sm:$0xff]   ;;  %v1627_v12 = vld [vmem:[#allocation2 + $0x178] sm:$0xff] }
  0x68   : > { %v2884_v63 = vcombine.high %v1530_v58, %v1530_v58  ;;  %v2883_v1 = vcombine.low %v1530_v58, %v1530_v58  ;;  %v3145_v15 = vld [vmem:[#allocation2 + $0x168] ss:$8 sps:$4 sm:$0xff]   ;;  %v2891_v18 = vcombine.high %v1627_v12, %v1627_v12  ;;  %v2890_v19 = vcombine.low %v1627_v12, %v1627_v12  ;;  %v3154_v20 = vld [vmem:[#allocation2 + $0x64] ss:$8 sps:$4 sm:$0xff]  }
  0x69   : > { %v447_v2 = vsel %vm281_vm0, %v2799_v62, 0  ;;  %v3157_v22 = vld [vmem:[#allocation2 + $0x184] ss:$8 sps:$4 sm:$0xff]   ;;  %v604_v25 = vld [vmem:[#allocation2 + $0x70] sm:$0xff]  ;;  %v3152_v30 = vld [vmem:[#allocation2 + $0x60] ss:$8 sps:$4 sm:$0xff]  }
  0x6a   : > { %421 = vrot.lane.b32.xlu1 %v3500_v8, %s3343_s12  ;;  %v1557_v5 = vsel %vm281_vm0, %v2883_v1, 0  ;;  %v1650_v21 = vsel %vm281_vm0, %v2890_v19, 0  ;;  %v1715_v26 = vld [vmem:[#allocation2 + $0x190] sm:$0xff]  ;;  %v3155_v31 = vld [vmem:[#allocation2 + $0x180] ss:$8 sps:$4 sm:$0xff]   ;;  %v2814_v33 = vcombine.high %v604_v25, %v604_v25  ;;  %v2813_v35 = vcombine.low %v604_v25, %v604_v25 }
  0x6b   : > { %1439 = vrot.lane.b32.xlu0 %v3495_v4, %s3345_s14  ;;  %v2898_v36 = vcombine.high %v1715_v26, %v1715_v26  ;;  %v2897_v37 = vcombine.low %v1715_v26, %v1715_v26  ;;  %v3164_v41 = vld [vmem:[#allocation2 + $0x7c] ss:$8 sps:$4 sm:$0xff]   ;;  %v3172_v62 = vld [vmem:[#allocation2 + $0x90] ss:$8 sps:$4 sm:$0xff]  }
  0x6c   : > { %v631_v40 = vsel %vm281_vm0, %v2813_v35, 0  ;;  %v975_v26 = vld [vmem:[#allocation2 + $0xd0] sm:$0xff]  ;;  %v3195_v35 = vld [vmem:[#allocation2 + $0x1e0] ss:$8 sps:$4 sm:$0xff]  }
  0x6e   : > { %423 = vrot.lane.b32.xlu1 %v3508_v10, %s3343_s12 }
  0x6f   : > { %1441 = vrot.lane.b32.xlu0 %v3504_v9, %s3345_s14 }
  0x72   : > { %513 = vrot.lane.b32.xlu1 %v3500_v8, %s3345_s14 }
  0x73   : > { %1531 = vrot.lane.b32.xlu0 %v3495_v4, %s3346_s16 }
  0x76   : > { %515 = vrot.lane.b32.xlu1 %v3508_v10, %s3345_s14 }
  0x77   : > { %1533 = vrot.lane.b32.xlu0 %v3504_v9, %s3346_s16 }
  0x7a   : > { %607 = vrot.lane.b32.xlu1 %v3508_v10, %s3346_s16 }
  0x7b   : > { %605 = vrot.lane.b32.xlu0 %v3500_v8, %s3346_s16 }
  0x7e   : > { %1720 = vrot.lane.b32.xlu1 %v3539_v28, %s3344_s13 }
  0x7f   : > { %1718 = vrot.lane.b32.xlu0 %v3543_v29, %s3344_s13 }
  0x82   : > { %792 = vrot.lane.b32.xlu1 %v3549_v32, %s3344_s13 }
  0x83   : > { %1810 = vrot.lane.b32.xlu0 %v3543_v29, %s3343_s12 }
  0x86   : > { %794 = vrot.lane.b32.xlu1 %v3556_v34, %s3344_s13 }
  0x87   : > { %1812 = vrot.lane.b32.xlu0 %v3539_v28, %s3343_s12 }
  0x8a   : > { %884 = vrot.lane.b32.xlu1 %v3549_v32, %s3343_s12 }
  0x8b   : > { %1902 = vrot.lane.b32.xlu0 %v3543_v29, %s3345_s14 }
  0x8e   : > { %886 = vrot.lane.b32.xlu1 %v3556_v34, %s3343_s12 }
  0x8f   : > { %1904 = vrot.lane.b32.xlu0 %v3539_v28, %s3345_s14 }
  0x92   : > { %976 = vrot.lane.b32.xlu1 %v3549_v32, %s3345_s14 }
  0x93   : > { %1994 = vrot.lane.b32.xlu0 %v3543_v29, %s3346_s16 }
  0x96   : > { %978 = vrot.lane.b32.xlu1 %v3556_v34, %s3345_s14 }
  0x97   : > { %1996 = vrot.lane.b32.xlu0 %v3539_v28, %s3346_s16 }
  0x9a   : > { %1070 = vrot.lane.b32.xlu1 %v3556_v34, %s3346_s16 }
  0x9b   : > { %1068 = vrot.lane.b32.xlu0 %v3549_v32, %s3346_s16 }
  0x9e   : > { %2183 = vrot.lane.b32.xlu1 %v3585_v38, %s3344_s13 }
  0x9f   : > { %2181 = vrot.lane.b32.xlu0 %v3589_v39, %s3344_s13 }
  0xa2   : > { %1255 = vrot.lane.b32.xlu1 %v3495_v4, %s3344_s13 }
  0xa3   : > { %2273 = vrot.lane.b32.xlu0 %v3589_v39, %s3343_s12 }
  0xa6   : > { %1257 = vrot.lane.b32.xlu1 %v3504_v9, %s3344_s13 }
  0xa7   : > { %2275 = vrot.lane.b32.xlu0 %v3585_v38, %s3343_s12 }
  0xaa   : > { %2367 = vrot.lane.b32.xlu1 %v3585_v38, %s3345_s14 }
  0xab   : > { %2365 = vrot.lane.b32.xlu0 %v3589_v39, %s3345_s14 }
  0xae   : > { %2459 = vrot.lane.b32.xlu1 %v3585_v38, %s3346_s16 }
  0xaf   : > { %2457 = vrot.lane.b32.xlu0 %v3589_v39, %s3346_s16 }
  0xd4   : > { %v1348_v43 = vpop.permute.xlu1 %1347 }
  0xd5   : > { %v256_v47 = vpop.permute.xlu0 %255  ;;  %2872 = vmatmul.mubr.msk.bf16.vlgmr.msra.gmra.mrb[0].mxu0 %vm274_vm1, %v1348_v43 }
  0xd6   : > { %2788 = vmatmul.mubr.msk.bf16.vlgmr.msra.gmra.mrb[0].mxu1 %vm274_vm1, %v256_v47  ;;  %1420 = vmatprep.mubr.bf16.mxu0 %v3342_v0  ;;  %v1809_v47 = vld [vmem:[#allocation2 + $0x1a8] sm:$0xff] }
  0xd7   : > { %330 = vmatprep.mubr.bf16.mxu1 %v3342_v0  ;;  %367 = vmatpush1.bf16.msra.mxu1 %v3122_v42  ;;  %v1744_v42 = vsel %vm281_vm0, %v2897_v37, 0  ;;  %v2841_v37 = vcombine.low %v975_v26, %v975_v26 }
  0xd8   : > { %1471 = vmatpush1.bf16.msra.mxu0 %v3125_v44  ;;  %2794 = vmatprep.subr.msk.bf16.mxu1 %vm281_vm0, %v2793_v45  ;;  %v1350_v54 = vpop.permute.xlu1 %1349  ;;  %v701_v45 = vld [vmem:[#allocation2 + $0x88] sm:$0xff] }
  0xd9   : > { %2878 = vmatprep.subr.msk.bf16.mxu0 %vm281_vm0, %v2877_v48  ;;  %v258_v55 = vpop.permute.xlu0 %257  ;;  %v3162_v48 = vld [vmem:[#allocation2 + $0x78] ss:$8 sps:$4 sm:$0xff]  }
  0xdb   : > { %369 = vmatpush1.bf16.msra.mxu1 %v361_v50  ;;  %v3165_v50 = vld [vmem:[#allocation2 + $0x198] ss:$8 sps:$4 sm:$0xff]  }
  0xdc   : > { %1473 = vmatpush1.bf16.msra.mxu0 %v1465_v52  ;;  %452 = vmatprep.subr.bf16.mxu1 %v3134_v51  ;;  %v422_v13 = vpop.permute.xlu1 %421  ;;  %v2821_v51 = vcombine.high %v701_v45, %v701_v45  ;;  %v2820_v52 = vcombine.low %v701_v45, %v701_v45 }
  0xdd   : > { %2873 = vmatmul.mubr.msk.bf16.gmra.mrb[4].mxu0 %vm274_vm1, %v1350_v54  ;;  %1562 = vmatprep.subr.bf16.mxu0 %v3137_v53  ;;  %v1440_v57 = vpop.permute.xlu0 %1439  ;;  %v2905_v53 = vcombine.high %v1809_v47, %v1809_v47  ;;  %v2904_v54 = vcombine.low %v1809_v47, %v1809_v47  ;;  %v1067_v47 = vld [vmem:[#allocation2 + $0xe8] sm:$0xff] }
  0xde   : > { %2789 = vmatmul.mubr.msk.bf16.gmra.mrb[4].mxu1 %vm274_vm1, %v258_v55  ;;  %1502 = vmatprep.mubr.bf16.mxu0 %v3342_v0  ;;  %v3174_v55 = vld [vmem:[#allocation2 + $0x94] ss:$8 sps:$4 sm:$0xff]  }
  0xdf   : > { %398 = vmatprep.mubr.bf16.mxu1 %v3342_v0  ;;  %v1836_v56 = vsel %vm281_vm0, %v2904_v54, 0 }
  0xe0   : > { %v424_v24 = vpop.permute.xlu1 %423 }
  0xe1   : > { %v1442_v7 = vpop.permute.xlu0 %1441 }
  0xe4   : > { %v514_v27 = vpop.permute.xlu1 %513 }
  0xe5   : > { %2879 = vmatmul.mubr.msk.bf16.vlgmr.msra.gmra.mrb[0].mxu0 %vm274_vm1, %v1440_v57  ;;  %v1532_v11 = vpop.permute.xlu0 %1531  ;;  %v3177_v57 = vld [vmem:[#allocation2 + $0x1b4] ss:$8 sps:$4 sm:$0xff]  }
  0xe6   : > { %2795 = vmatmul.mubr.msk.bf16.vlgmr.msra.gmra.mrb[0].mxu1 %vm274_vm1, %v3500_v8  ;;  %1512 = vmatprep.mubr.bf16.mxu0 %v3342_v0  ;;  %v512_v8 = vld [vmem:[#allocation2 + $0x58] sm:$0xff] }
  0xe7   : > { %408 = vmatprep.mubr.bf16.mxu1 %v3342_v0  ;;  %453 = vmatpush1.bf16.msra.mxu1 %v3132_v59  ;;  %v2807_v16 = vcombine.high %v512_v8, %v512_v8  ;;  %v2806_v17 = vcombine.low %v512_v8, %v512_v8  ;;  %v789_v59 = vld [vmem:[#allocation2 + $0xa0] sm:$0xff] }
  0xe8   : > { %1563 = vmatpush1.bf16.msra.mxu0 %v3135_v60  ;;  %2801 = vmatprep.subr.msk.bf16.mxu1 %vm281_vm0, %v2800_v61  ;;  %v516_v43 = vpop.permute.xlu1 %515  ;;  %v1901_v61 = vld [vmem:[#allocation2 + $0x1c0] sm:$0xff]  ;;  %v2828_v1 = vcombine.high %v789_v59, %v789_v59 }
  0xe9   : > { %2885 = vmatprep.subr.msk.bf16.mxu0 %vm281_vm0, %v2884_v63  ;;  %v1534_v23 = vpop.permute.xlu0 %1533  ;;  %v3175_v63 = vld [vmem:[#allocation2 + $0x1b0] ss:$8 sps:$4 sm:$0xff]  }
  0xeb   : > { %455 = vmatpush1.bf16.msra.mxu1 %v447_v2  ;;  %v2827_v2 = vcombine.low %v789_v59, %v789_v59 }
  0xec   : > { %1565 = vmatpush1.bf16.msra.mxu0 %v1557_v5  ;;  %544 = vmatprep.subr.bf16.mxu1 %v3144_v3  ;;  %v608_v49 = vpop.permute.xlu1 %607  ;;  %v2912_v3 = vcombine.high %v1901_v61, %v1901_v61  ;;  %v2911_v5 = vcombine.low %v1901_v61, %v1901_v61 }
  0xed   : > { %2880 = vmatmul.mubr.msk.bf16.gmra.mrb[8].mxu0 %vm274_vm1, %v1442_v7  ;;  %1655 = vmatprep.subr.bf16.mxu0 %v3147_v6  ;;  %v606_v44 = vpop.permute.xlu0 %605  ;;  %v818_v6 = vsel %vm281_vm0, %v2827_v2, 0  ;;  %v3184_v7 = vld [vmem:[#allocation2 + $0xac] ss:$8 sps:$4 sm:$0xff]   ;;  %v3215_v2 = vld [vmem:[#allocation2 + $0x210] ss:$8 sps:$4 sm:$0xff]  }
  0xee   : > { %2796 = vmatmul.mubr.msk.bf16.gmra.mrb[8].mxu1 %vm274_vm1, %v3508_v10  ;;  %1594 = vmatprep.mubr.bf16.mxu0 %v3342_v0  ;;  %v539_v10 = vsel %vm281_vm0, %v2806_v17, 0  ;;  %v1928_v8 = vsel %vm281_vm0, %v2911_v5, 0  ;;  %v3185_v17 = vld [vmem:[#allocation2 + $0x1c8] ss:$8 sps:$4 sm:$0xff]  }
  0xef   : > { %484 = vmatprep.mubr.bf16.mxu1 %v3342_v0 }
  0xf0   : > { %v1721_v58 = vpop.permute.xlu1 %1720 }
  0xf1   : > { %v1719_v46 = vpop.permute.xlu0 %1718 }
  0xf5   : > { %2886 = vmatmul.mubr.msk.bf16.vlgmr.msra.gmra.mrb[0].mxu0 %vm274_vm1, %v1532_v11  ;;  %v1811_v60 = vpop.permute.xlu0 %1810  ;;  %v3187_v11 = vld [vmem:[#allocation2 + $0x1cc] ss:$8 sps:$4 sm:$0xff]  }
  0xf6   : > { %2802 = vmatmul.mubr.msk.bf16.vlgmr.msra.gmra.mrb[0].mxu1 %vm274_vm1, %v422_v13  ;;  %1604 = vmatprep.mubr.bf16.mxu0 %v3342_v0 }
  0xf7   : > { %494 = vmatprep.mubr.bf16.mxu1 %v3342_v0  ;;  %545 = vmatpush1.bf16.msra.mxu1 %v3142_v14  ;;  %v1993_v14 = vld [vmem:[#allocation2 + $0x1d8] sm:$0xff] }
  0xf8   : > { %1656 = vmatpush1.bf16.msra.mxu0 %v3145_v15  ;;  %2808 = vmatprep.subr.msk.bf16.mxu1 %vm281_vm0, %v2807_v16  ;;  %v793_v15 = vpop.permute.xlu1 %792  ;;  %v3182_v16 = vld [vmem:[#allocation2 + $0xa8] ss:$8 sps:$4 sm:$0xff]  }
  0xf9   : > { %2892 = vmatprep.subr.msk.bf16.mxu0 %vm281_vm0, %v2891_v18  ;;  %v1813_v12 = vpop.permute.xlu0 %1812 }
  0xfb   : > { %547 = vmatpush1.bf16.msra.mxu1 %v539_v10  ;;  %v2919_v10 = vcombine.high %v1993_v14, %v1993_v14 }
  0xfc   : > { %1658 = vmatpush1.bf16.msra.mxu0 %v1650_v21  ;;  %636 = vmatprep.subr.bf16.mxu1 %v3154_v20  ;;  %v2918_v20 = vcombine.low %v1993_v14, %v1993_v14  ;;  %v3194_v21 = vld [vmem:[#allocation2 + $0xc4] ss:$8 sps:$4 sm:$0xff]   ;;  %v795_v25 = vpop.permute.xlu1 %794 }
  0xfd   : > { %2887 = vmatmul.mubr.msk.bf16.gmra.mrb[12].mxu0 %vm274_vm1, %v1534_v23  ;;  %1749 = vmatprep.subr.bf16.mxu0 %v3157_v22  ;;  %v1903_v13 = vpop.permute.xlu0 %1902  ;;  %v3197_v23 = vld [vmem:[#allocation2 + $0x1e4] ss:$8 sps:$4 sm:$0xff]  }
  0xfe   : > { %2803 = vmatmul.mubr.msk.bf16.gmra.mrb[12].mxu1 %vm274_vm1, %v424_v24  ;;  %1687 = vmatprep.mubr.bf16.mxu0 %v3342_v0  ;;  %v2020_v22 = vsel %vm281_vm0, %v2918_v20, 0 }
  0xff   : > { %576 = vmatprep.mubr.bf16.mxu1 %v3342_v0 }
 0x101   : > { %v1905_v24 = vpop.permute.xlu0 %1904 }
 0x105   : > { %2893 = vmatmul.mubr.msk.bf16.vlgmr.msra.gmra.mrb[0].mxu0 %vm274_vm1, %v3543_v29  ;;  %v3167_v29 = vld [vmem:[#allocation2 + $0x19c] ss:$8 sps:$4 sm:$0xff]  }
 0x106   : > { %2809 = vmatmul.mubr.msk.bf16.vlgmr.msra.gmra.mrb[0].mxu1 %vm274_vm1, %v514_v27  ;;  %1697 = vmatprep.mubr.bf16.mxu0 %v3342_v0  ;;  %v1995_v27 = vpop.permute.xlu0 %1994 }
 0x107   : > { %586 = vmatprep.mubr.bf16.mxu1 %v3342_v0  ;;  %637 = vmatpush1.bf16.msra.mxu1 %v3152_v30  ;;  %v2090_v30 = vld [vmem:[#allocation2 + $0x1f0] sm:$0xff] }
 0x108   : > { %1750 = vmatpush1.bf16.msra.mxu0 %v3155_v31  ;;  %2815 = vmatprep.subr.msk.bf16.mxu1 %vm281_vm0, %v2814_v33  ;;  %v885_v31 = vpop.permute.xlu1 %884  ;;  %v3192_v33 = vld [vmem:[#allocation2 + $0xc0] ss:$8 sps:$4 sm:$0xff]  }
 0x109   : > { %2899 = vmatprep.subr.msk.bf16.mxu0 %vm281_vm0, %v2898_v36  ;;  %v2842_v36 = vcombine.high %v975_v26, %v975_v26  ;;  %v3232_v26 = vld [vmem:[#allocation2 + $0x240] ss:$8 sps:$4 sm:$0xff]  }
 0x10a   : > { %v1997_v45 = vpop.permute.xlu0 %1996 }
 0x10b   : > { %639 = vmatpush1.bf16.msra.mxu1 %v631_v40  ;;  %v2926_v40 = vcombine.high %v2090_v30, %v2090_v30 }
 0x10c   : > { %1752 = vmatpush1.bf16.msra.mxu0 %v1744_v42  ;;  %729 = vmatprep.subr.bf16.mxu1 %v3164_v41  ;;  %v2925_v41 = vcombine.low %v2090_v30, %v2090_v30  ;;  %v1002_v42 = vsel %vm281_vm0, %v2841_v37, 0 }
 0x10d   : > { %2894 = vmatmul.mubr.msk.bf16.gmra.mrb[16].mxu0 %vm274_vm1, %v3539_v28  ;;  %1841 = vmatprep.subr.bf16.mxu0 %v3167_v29  ;;  %v724_v28 = vsel %vm281_vm0, %v2820_v52, 0  ;;  %v3204_v29 = vld [vmem:[#allocation2 + $0xdc] ss:$8 sps:$4 sm:$0xff]   ;;  %v2849_v52 = vcombine.high %v1067_v47, %v1067_v47 }
 0x10e   : > { %2810 = vmatmul.mubr.msk.bf16.gmra.mrb[16].mxu1 %vm274_vm1, %v516_v43  ;;  %1781 = vmatprep.mubr.bf16.mxu0 %v3342_v0  ;;  %v2113_v43 = vsel %vm281_vm0, %v2925_v41, 0  ;;  %v1069_v59 = vpop.permute.xlu0 %1068 }
 0x10f   : > { %668 = vmatprep.mubr.bf16.mxu1 %v3342_v0 }
 0x112   : > { %v2182_v61 = vpop.permute.xlu0 %2181 }
 0x115   : > { %2900 = vmatmul.mubr.msk.bf16.vlgmr.msra.gmra.mrb[0].mxu0 %vm274_vm1, %v1719_v46  ;;  %v887_v46 = vpop.permute.xlu1 %886 }
 0x116   : > { %2816 = vmatmul.mubr.msk.bf16.vlgmr.msra.gmra.mrb[0].mxu1 %vm274_vm1, %v606_v44  ;;  %1791 = vmatprep.mubr.bf16.mxu0 %v3342_v0  ;;  %v3207_v44 = vld [vmem:[#allocation2 + $0x1fc] ss:$8 sps:$4 sm:$0xff]   ;;  %v2274_v14 = vpop.permute.xlu0 %2273 }
 0x117   : > { %678 = vmatprep.mubr.bf16.mxu1 %v3342_v0  ;;  %730 = vmatpush1.bf16.msra.mxu1 %v3162_v48  ;;  %v2178_v48 = vld [vmem:[#allocation2 + $0x208] sm:$0xff] }
 0x118   : > { %1842 = vmatpush1.bf16.msra.mxu0 %v3165_v50  ;;  %2822 = vmatprep.subr.msk.bf16.mxu1 %vm281_vm0, %v2821_v51  ;;  %v3202_v50 = vld [vmem:[#allocation2 + $0xd8] ss:$8 sps:$4 sm:$0xff]   ;;  %v2933_v54 = vcombine.high %v2178_v48, %v2178_v48 }
 0x119   : > { %2906 = vmatprep.subr.msk.bf16.mxu0 %vm281_vm0, %v2905_v53  ;;  %v3205_v51 = vld [vmem:[#allocation2 + $0x1f8] ss:$8 sps:$4 sm:$0xff]   ;;  %v2848_v53 = vcombine.low %v1067_v47, %v1067_v47 }
 0x11b   : > { %732 = vmatpush1.bf16.msra.mxu1 %v724_v28  ;;  %v2932_v28 = vcombine.low %v2178_v48, %v2178_v48 }
 0x11c   : > { %1844 = vmatpush1.bf16.msra.mxu0 %v1836_v56  ;;  %823 = vmatprep.subr.bf16.mxu1 %v3174_v55  ;;  %v1094_v55 = vsel %vm281_vm0, %v2848_v53, 0  ;;  %v3214_v56 = vld [vmem:[#allocation2 + $0xf4] ss:$8 sps:$4 sm:$0xff]  }
 0x11d   : > { %2901 = vmatmul.mubr.msk.bf16.gmra.mrb[20].mxu0 %vm274_vm1, %v1721_v58  ;;  %1933 = vmatprep.subr.bf16.mxu0 %v3177_v57  ;;  %v2207_v57 = vsel %vm281_vm0, %v2932_v28, 0 }
 0x11e   : > { %2817 = vmatmul.mubr.msk.bf16.gmra.mrb[20].mxu1 %vm274_vm1, %v608_v49  ;;  %1873 = vmatprep.mubr.bf16.mxu0 %v3342_v0  ;;  %v977_v49 = vpop.permute.xlu1 %976 }
 0x11f   : > { %761 = vmatprep.mubr.bf16.mxu1 %v3342_v0 }
 0x122   : > { %v979_v58 = vpop.permute.xlu1 %978 }
 0x125   : > { %2907 = vmatmul.mubr.msk.bf16.vlgmr.msra.gmra.mrb[0].mxu0 %vm274_vm1, %v1811_v60  ;;  %v1164_v60 = vld [vmem:[#allocation2 + $0x100] sm:$0xff] }
 0x126   : > { %2823 = vmatmul.mubr.msk.bf16.vlgmr.msra.gmra.mrb[0].mxu1 %vm274_vm1, %v3549_v32  ;;  %1883 = vmatprep.mubr.bf16.mxu0 %v3342_v0  ;;  %v883_v32 = vld [vmem:[#allocation2 + $0xb8] sm:$0xff]  ;;  %v2855_v5 = vcombine.low %v1164_v60, %v1164_v60 }
 0x127   : > { %771 = vmatprep.mubr.bf16.mxu1 %v3342_v0  ;;  %824 = vmatpush1.bf16.msra.mxu1 %v3172_v62  ;;  %v2835_v18 = vcombine.high %v883_v32, %v883_v32  ;;  %v2834_v19 = vcombine.low %v883_v32, %v883_v32  ;;  %v2272_v62 = vld [vmem:[#allocation2 + $0x220] sm:$0xff] }
 0x128   : > { %1934 = vmatpush1.bf16.msra.mxu0 %v3175_v63  ;;  %2829 = vmatprep.subr.msk.bf16.mxu1 %vm281_vm0, %v2828_v1  ;;  %v3212_v63 = vld [vmem:[#allocation2 + $0xf0] ss:$8 sps:$4 sm:$0xff]   ;;  %v1071_v1 = vpop.permute.xlu1 %1070 }
 0x129   : > { %2913 = vmatprep.subr.msk.bf16.mxu0 %vm281_vm0, %v2912_v3  ;;  %v2856_v3 = vcombine.high %v1164_v60, %v1164_v60 }
 0x12b   : > { %826 = vmatpush1.bf16.msra.mxu1 %v818_v6  ;;  %v2940_v6 = vcombine.high %v2272_v62, %v2272_v62 }
 0x12c   : > { %1936 = vmatpush1.bf16.msra.mxu0 %v1928_v8  ;;  %915 = vmatprep.subr.bf16.mxu1 %v3184_v7  ;;  %v2939_v7 = vcombine.low %v2272_v62, %v2272_v62  ;;  %v3224_v8 = vld [vmem:[#allocation2 + $0x10c] ss:$8 sps:$4 sm:$0xff]   ;;  %v2184_v32 = vpop.permute.xlu1 %2183 }
 0x12d   : > { %2908 = vmatmul.mubr.msk.bf16.gmra.mrb[24].mxu0 %vm274_vm1, %v1813_v12  ;;  %2025 = vmatprep.subr.bf16.mxu0 %v3187_v11  ;;  %v3227_v12 = vld [vmem:[#allocation2 + $0x22c] ss:$8 sps:$4 sm:$0xff]  }
 0x12e   : > { %2824 = vmatmul.mubr.msk.bf16.gmra.mrb[24].mxu1 %vm274_vm1, %v3556_v34  ;;  %1965 = vmatprep.mubr.bf16.mxu0 %v3342_v0  ;;  %v910_v34 = vsel %vm281_vm0, %v2834_v19, 0  ;;  %v2299_v11 = vsel %vm281_vm0, %v2939_v7, 0 }
 0x12f   : > { %855 = vmatprep.mubr.bf16.mxu1 %v3342_v0 }
 0x135   : > { %2914 = vmatmul.mubr.msk.bf16.vlgmr.msra.gmra.mrb[0].mxu0 %vm274_vm1, %v1903_v13  ;;  %v1252_v13 = vld [vmem:[#allocation2 + $0x118] sm:$0xff] }
 0x136   : > { %2830 = vmatmul.mubr.msk.bf16.vlgmr.msra.gmra.mrb[0].mxu1 %vm274_vm1, %v793_v15  ;;  %1975 = vmatprep.mubr.bf16.mxu0 %v3342_v0  ;;  %v2364_v15 = vld [vmem:[#allocation2 + $0x238] sm:$0xff]  ;;  %v2862_v19 = vcombine.low %v1252_v13, %v1252_v13 }
 0x137   : > { %865 = vmatprep.mubr.bf16.mxu1 %v3342_v0  ;;  %916 = vmatpush1.bf16.msra.mxu1 %v3182_v16  ;;  %v3222_v16 = vld [vmem:[#allocation2 + $0x108] ss:$8 sps:$4 sm:$0xff]   ;;  %v2946_v20 = vcombine.low %v2364_v15, %v2364_v15 }
 0x138   : > { %2026 = vmatpush1.bf16.msra.mxu0 %v3185_v17  ;;  %2836 = vmatprep.subr.msk.bf16.mxu1 %vm281_vm0, %v2835_v18  ;;  %v3225_v17 = vld [vmem:[#allocation2 + $0x228] ss:$8 sps:$4 sm:$0xff]   ;;  %v2863_v18 = vcombine.high %v1252_v13, %v1252_v13 }
 0x139   : > { %2920 = vmatprep.subr.msk.bf16.mxu0 %vm281_vm0, %v2919_v10  ;;  %v2947_v10 = vcombine.high %v2364_v15, %v2364_v15 }
 0x13b   : > { %918 = vmatpush1.bf16.msra.mxu1 %v910_v34  ;;  %v1281_v34 = vsel %vm281_vm0, %v2862_v19, 0 }
 0x13c   : > { %2028 = vmatpush1.bf16.msra.mxu0 %v2020_v22  ;;  %1007 = vmatprep.subr.bf16.mxu1 %v3194_v21  ;;  %v2391_v21 = vsel %vm281_vm0, %v2946_v20, 0  ;;  %v3234_v22 = vld [vmem:[#allocation2 + $0x244] ss:$8 sps:$4 sm:$0xff]  }
 0x13d   : > { %2915 = vmatmul.mubr.msk.bf16.gmra.mrb[28].mxu0 %vm274_vm1, %v1905_v24  ;;  %2118 = vmatprep.subr.bf16.mxu0 %v3197_v23  ;;  %v2276_v23 = vpop.permute.xlu0 %2275  ;;  %v2456_v24 = vld [vmem:[#allocation2 + $0x250] sm:$0xff] }
 0x13e   : > { %2831 = vmatmul.mubr.msk.bf16.gmra.mrb[28].mxu1 %vm274_vm1, %v795_v25  ;;  %2057 = vmatprep.mubr.bf16.mxu0 %v3342_v0  ;;  %v2954_v30 = vcombine.high %v2456_v24, %v2456_v24 }
 0x13f   : > { %947 = vmatprep.mubr.bf16.mxu1 %v3342_v0 }
 0x141   : > { %v2366_v25 = vpop.permute.xlu0 %2365 }
 0x145   : > { %2921 = vmatmul.mubr.msk.bf16.vlgmr.msra.gmra.mrb[0].mxu0 %vm274_vm1, %v1995_v27 }
 0x146   : > { %2837 = vmatmul.mubr.msk.bf16.vlgmr.msra.gmra.mrb[0].mxu1 %vm274_vm1, %v885_v31  ;;  %2067 = vmatprep.mubr.bf16.mxu0 %v3342_v0  ;;  %v2953_v31 = vcombine.low %v2456_v24, %v2456_v24  ;;  %v3347_v24 = vmov 0.0  }
 0x147   : > { %957 = vmatprep.mubr.bf16.mxu1 %v3342_v0  ;;  %1008 = vmatpush1.bf16.msra.mxu1 %v3192_v33 }
 0x148   : > { %2119 = vmatpush1.bf16.msra.mxu0 %v3195_v35  ;;  %2843 = vmatprep.subr.msk.bf16.mxu1 %vm281_vm0, %v2842_v36  ;;  %v2458_v35 = vpop.permute.xlu0 %2457 }
 0x149   : > { %2927 = vmatprep.subr.msk.bf16.mxu0 %vm281_vm0, %v2926_v40 }
 0x14b   : > { %1010 = vmatpush1.bf16.msra.mxu1 %v1002_v42 }
 0x14c   : > { %2121 = vmatpush1.bf16.msra.mxu0 %v2113_v43  ;;  %1099 = vmatprep.subr.bf16.mxu1 %v3204_v29 }
 0x14d   : > { %2922 = vmatmul.mubr.msk.bf16.gmra.mrb[32].mxu0 %vm274_vm1, %v1997_v45  ;;  %2212 = vmatprep.subr.bf16.mxu0 %v3207_v44 }
 0x14e   : > { %2838 = vmatmul.mubr.msk.bf16.gmra.mrb[32].mxu1 %vm274_vm1, %v887_v46  ;;  %2150 = vmatprep.mubr.bf16.mxu0 %v3342_v0 }
 0x14f   : > { %1039 = vmatprep.mubr.bf16.mxu1 %v3342_v0 }
 0x155   : > { %2928 = vmatmul.mubr.msk.bf16.vlgmr.msra.gmra.mrb[0].mxu0 %vm274_vm1, %v3589_v39  ;;  %v3217_v39 = vld [vmem:[#allocation2 + $0x214] ss:$8 sps:$4 sm:$0xff]  }
 0x156   : > { %2844 = vmatmul.mubr.msk.bf16.vlgmr.msra.gmra.mrb[0].mxu1 %vm274_vm1, %v977_v49  ;;  %2160 = vmatprep.mubr.bf16.mxu0 %v3342_v0 }
 0x157   : > { %1049 = vmatprep.mubr.bf16.mxu1 %v3342_v0  ;;  %1100 = vmatpush1.bf16.msra.mxu1 %v3202_v50 }
 0x158   : > { %2213 = vmatpush1.bf16.msra.mxu0 %v3205_v51  ;;  %2850 = vmatprep.subr.msk.bf16.mxu1 %vm281_vm0, %v2849_v52 }
 0x159   : > { %2934 = vmatprep.subr.msk.bf16.mxu0 %vm281_vm0, %v2933_v54 }
 0x15b   : > { %1102 = vmatpush1.bf16.msra.mxu1 %v1094_v55 }
 0x15c   : > { %2215 = vmatpush1.bf16.msra.mxu0 %v2207_v57  ;;  %1192 = vmatprep.subr.bf16.mxu1 %v3214_v56 }
 0x15d   : > { %2929 = vmatmul.mubr.msk.bf16.gmra.mrb[36].mxu0 %vm274_vm1, %v3585_v38  ;;  %2304 = vmatprep.subr.bf16.mxu0 %v3217_v39  ;;  %v1187_v38 = vsel %vm281_vm0, %v2855_v5, 0 }
 0x15e   : > { %2845 = vmatmul.mubr.msk.bf16.gmra.mrb[36].mxu1 %vm274_vm1, %v979_v58  ;;  %2244 = vmatprep.mubr.bf16.mxu0 %v3342_v0 }
 0x15f   : > { %1131 = vmatprep.mubr.bf16.mxu1 %v3342_v0 }
 0x165   : > { %2935 = vmatmul.mubr.msk.bf16.vlgmr.msra.gmra.mrb[0].mxu0 %vm274_vm1, %v2182_v61 }
 0x166   : > { %2851 = vmatmul.mubr.msk.bf16.vlgmr.msra.gmra.mrb[0].mxu1 %vm274_vm1, %v1069_v59  ;;  %2254 = vmatprep.mubr.bf16.mxu0 %v3342_v0 }
 0x167   : > { %1141 = vmatprep.mubr.bf16.mxu1 %v3342_v0  ;;  %1193 = vmatpush1.bf16.msra.mxu1 %v3212_v63 }
 0x168   : > { %2305 = vmatpush1.bf16.msra.mxu0 %v3215_v2  ;;  %2857 = vmatprep.subr.msk.bf16.mxu1 %vm281_vm0, %v2856_v3 }
 0x169   : > { %2941 = vmatprep.subr.msk.bf16.mxu0 %vm281_vm0, %v2940_v6 }
 0x16b   : > { %1195 = vmatpush1.bf16.msra.mxu1 %v1187_v38 }
 0x16c   : > { %2307 = vmatpush1.bf16.msra.mxu0 %v2299_v11  ;;  %1286 = vmatprep.subr.bf16.mxu1 %v3224_v8 }
 0x16d   : > { %2936 = vmatmul.mubr.msk.bf16.gmra.mrb[40].mxu0 %vm274_vm1, %v2184_v32  ;;  %2396 = vmatprep.subr.bf16.mxu0 %v3227_v12 }
 0x16e   : > { %2852 = vmatmul.mubr.msk.bf16.gmra.mrb[40].mxu1 %vm274_vm1, %v1071_v1  ;;  %2336 = vmatprep.mubr.bf16.mxu0 %v3342_v0 }
 0x16f   : > { %1224 = vmatprep.mubr.bf16.mxu1 %v3342_v0 }
 0x175   : > { %2942 = vmatmul.mubr.msk.bf16.vlgmr.msra.gmra.mrb[0].mxu0 %vm274_vm1, %v2274_v14 }
 0x176   : > { %2858 = vmatmul.mubr.msk.bf16.vlgmr.msra.gmra.mrb[0].mxu1 %vm274_vm1, %v3495_v4  ;;  %2346 = vmatprep.mubr.bf16.mxu0 %v3342_v0  ;;  %v1256_v4 = vpop.permute.xlu1 %1255 }
 0x177   : > { %1234 = vmatprep.mubr.bf16.mxu1 %v3342_v0  ;;  %1287 = vmatpush1.bf16.msra.mxu1 %v3222_v16 }
 0x178   : > { %2397 = vmatpush1.bf16.msra.mxu0 %v3225_v17  ;;  %2864 = vmatprep.subr.msk.bf16.mxu1 %vm281_vm0, %v2863_v18 }
 0x179   : > { %2948 = vmatprep.subr.msk.bf16.mxu0 %vm281_vm0, %v2947_v10 }
 0x17a   : > { %v1258_v27 = vpop.permute.xlu1 %1257 }
 0x17b   : > { %1289 = vmatpush1.bf16.msra.mxu1 %v1281_v34 }
 0x17c   : > { %2399 = vmatpush1.bf16.msra.mxu0 %v2391_v21 }
 0x17d   : > { %2943 = vmatmul.mubr.msk.bf16.gmra.mrb[44].mxu0 %vm274_vm1, %v2276_v23  ;;  %2488 = vmatprep.subr.bf16.mxu0 %v3234_v22 }
 0x17e   : > { %2859 = vmatmul.mubr.msk.bf16.gmra.mrb[44].mxu1 %vm274_vm1, %v3504_v9  ;;  %2428 = vmatprep.mubr.bf16.mxu0 %v3342_v0  ;;  %v2483_v9 = vsel %vm281_vm0, %v2953_v31, 0  ;;  %v2368_v33 = vpop.permute.xlu1 %2367 }
 0x17f   : > { %1318 = vmatprep.mubr.bf16.mxu1 %v3342_v0 }
 0x182   : > { %v2460_v36 = vpop.permute.xlu1 %2459 }
 0x185   : > { %2949 = vmatmul.mubr.msk.bf16.vlgmr.msra.gmra.mrb[0].mxu0 %vm274_vm1, %v2366_v25 }
 0x186   : > { %2865 = vmatmul.mubr.msk.bf16.vlgmr.msra.gmra.mrb[0].mxu1 %vm274_vm1, %v1256_v4  ;;  %2438 = vmatprep.mubr.bf16.mxu0 %v3342_v0 }
 0x187   : > { %1328 = vmatprep.mubr.bf16.mxu1 %v3342_v0  ;;  %2489 = vmatpush1.bf16.msra.mxu0 %v3232_v26 }
 0x188   : > { %2955 = vmatprep.subr.msk.bf16.mxu0 %vm281_vm0, %v2954_v30 }
 0x18b   : > { %2491 = vmatpush1.bf16.msra.mxu0 %v2483_v9 }
 0x18d   : > { %2950 = vmatmul.mubr.msk.bf16.gmra.mrb[48].mxu0 %vm274_vm1, %v2368_v33 }
 0x18e   : > { %2866 = vmatmul.mubr.msk.bf16.gmra.mrb[48].mxu1 %vm274_vm1, %v1258_v27  ;;  %2520 = vmatprep.mubr.bf16.mxu0 %v3342_v0 }
 0x18f   : > { %2639 = vmatprep.mubr.f32.mxu1 %v3347_v24 }
 0x195   : > { %2956 = vmatmul.mubr.msk.bf16.vlgmr.msra.gmra.mrb[0].mxu0 %vm274_vm1, %v2458_v35 }
 0x196   : > { %2530 = vmatprep.mubr.bf16.mxu0 %v3342_v0 }
 0x19d   : > { %2957 = vmatmul.mubr.msk.bf16.gmra.mrb[52].mxu0 %vm274_vm1, %v2460_v36 }
 0x1b0   : > { %v3765_v37 = vpop.f32.mrb[4].mxu0 }
 0x1b1   : > { %v332_v40 = vpop.f32.mrb[4].mxu1  ;;  %v3767_v41 = vpop.f32.mrb[5].mxu0 }
 0x1b2   : > { %v334_v42 = vpop.f32.mrb[5].mxu1  ;;  %v1426_v29 = vpop.f32.mrb[6].mxu0 }
 0x1b3   : > { %v336_v43 = vpop.f32.mrb[6].mxu1  ;;  %v1427_v44 = vpop.f32.mrb[7].mxu0 }
 0x1b4   : > { %v337_v45 = vpop.f32.mrb[7].mxu1 }
 0x1c0   : > { %v3769_v46 = vpop.f32.mrb[8].mxu0 }
 0x1c1   : > { %v410_v47 = vpop.f32.mrb[8].mxu1  ;;  %v3771_v48 = vpop.f32.mrb[9].mxu0 }
 0x1c2   : > { %v411_v49 = vadd.f32 %v410_v47, %v332_v40  ;;  %v412_v0 = vpop.f32.mrb[9].mxu1  ;;  %v1518_v50 = vpop.f32.mrb[10].mxu0 }
 0x1c3   : > { %v413_v51 = vadd.f32 %v412_v0, %v334_v42  ;;  %v414_v52 = vpop.f32.mrb[10].mxu1  ;;  %v1519_v53 = vpop.f32.mrb[11].mxu0 }
 0x1c4   : > { %v415_v54 = vpop.f32.mrb[11].mxu1 }
 0x1d0   : > { %v3773_v28 = vpop.f32.mrb[12].mxu0 }
 0x1d1   : > { %v496_v55 = vpop.f32.mrb[12].mxu1  ;;  %v3775_v56 = vpop.f32.mrb[13].mxu0 }
 0x1d2   : > { %v507_v57 = vadd.f32 %v496_v55, %v411_v49  ;;  %v498_v39 = vpop.f32.mrb[13].mxu1  ;;  %v1610_v58 = vpop.f32.mrb[14].mxu0 }
 0x1d3   : > { %v508_v59 = vadd.f32 %v498_v39, %v413_v51  ;;  %v500_v60 = vpop.f32.mrb[14].mxu1  ;;  %v1611_v61 = vpop.f32.mrb[15].mxu0 }
 0x1d4   : > { %v501_v62 = vpop.f32.mrb[15].mxu1 }
 0x1e0   : > { %v3777_v63 = vpop.f32.mrb[16].mxu0 }
 0x1e1   : > { %v588_v1 = vpop.f32.mrb[16].mxu1  ;;  %v3779_v2 = vpop.f32.mrb[17].mxu0 }
 0x1e2   : > { %v599_v3 = vadd.f32 %v588_v1, %v507_v57  ;;  %v590_v5 = vpop.f32.mrb[17].mxu1  ;;  %v1703_v6 = vpop.f32.mrb[18].mxu0 }
 0x1e3   : > { %v600_v7 = vadd.f32 %v590_v5, %v508_v59  ;;  %v592_v38 = vpop.f32.mrb[18].mxu1  ;;  %v1704_v8 = vpop.f32.mrb[19].mxu0 }
 0x1e4   : > { %v593_v11 = vpop.f32.mrb[19].mxu1 }
 0x1f0   : > { %v3781_v12 = vpop.f32.mrb[20].mxu0 }
 0x1f1   : > { %v680_v32 = vpop.f32.mrb[20].mxu1  ;;  %v3783_v13 = vpop.f32.mrb[21].mxu0 }
 0x1f2   : > { %v691_v14 = vadd.f32 %v680_v32, %v599_v3  ;;  %v682_v15 = vpop.f32.mrb[21].mxu1  ;;  %v1797_v16 = vpop.f32.mrb[22].mxu0 }
 0x1f3   : > { %v692_v17 = vadd.f32 %v682_v15, %v600_v7  ;;  %v684_v18 = vpop.f32.mrb[22].mxu1  ;;  %v1798_v19 = vpop.f32.mrb[23].mxu0 }
 0x1f4   : > { %v685_v10 = vpop.f32.mrb[23].mxu1 }
 0x200   : > { %v3785_v20 = vpop.f32.mrb[24].mxu0 }
 0x201   : > { %v773_v34 = vpop.f32.mrb[24].mxu1  ;;  %v3787_v21 = vpop.f32.mrb[25].mxu0 }
 0x202   : > { %v784_v22 = vadd.f32 %v773_v34, %v691_v14  ;;  %v775_v23 = vpop.f32.mrb[25].mxu1  ;;  %v1889_v4 = vpop.f32.mrb[26].mxu0 }
 0x203   : > { %v785_v25 = vadd.f32 %v775_v23, %v692_v17  ;;  %v777_v26 = vpop.f32.mrb[26].mxu1  ;;  %v1890_v27 = vpop.f32.mrb[27].mxu0 }
 0x204   : > { %v778_v30 = vpop.f32.mrb[27].mxu1 }
 0x210   : > { %v3790_v31 = vpop.f32.mrb[28].mxu0 }
 0x211   : > { %v867_v9 = vpop.f32.mrb[28].mxu1  ;;  %v3792_v33 = vpop.f32.mrb[29].mxu0 }
 0x212   : > { %v878_v35 = vadd.f32 %v867_v9, %v784_v22  ;;  %v869_v36 = vpop.f32.mrb[29].mxu1  ;;  %v1981_v40 = vpop.f32.mrb[30].mxu0 }
 0x213   : > { %v879_v42 = vadd.f32 %v869_v36, %v785_v25  ;;  %v871_v29 = vpop.f32.mrb[30].mxu1  ;;  %v1982_v43 = vpop.f32.mrb[31].mxu0  ;;  %v2547_v40 = vlaneseq }
 0x214   : > { %v872_v44 = vpop.f32.mrb[31].mxu1 }
 0x215   : > { %v2548_v44 = vshrl.u32 %v2547_v40, 7 }
 0x220   : > { %v3794_v45 = vpop.f32.mrb[32].mxu0 }
 0x221   : > { %v959_v47 = vpop.f32.mrb[32].mxu1  ;;  %v3796_v49 = vpop.f32.mrb[33].mxu0 }
 0x222   : > { %v970_v0 = vadd.f32 %v959_v47, %v878_v35  ;;  %v961_v50 = vpop.f32.mrb[33].mxu1  ;;  %v2073_v51 = vpop.f32.mrb[34].mxu0 }
 0x223   : > { %v971_v52 = vadd.f32 %v961_v50, %v879_v42  ;;  %v963_v53 = vpop.f32.mrb[34].mxu1  ;;  %v2074_v54 = vpop.f32.mrb[35].mxu0 }
 0x224   : > { %v964_v55 = vpop.f32.mrb[35].mxu1 }
 0x230   : > { %v3798_v57 = vpop.f32.mrb[36].mxu0 }
 0x231   : > { %v1051_v39 = vpop.f32.mrb[36].mxu1  ;;  %v3800_v58 = vpop.f32.mrb[37].mxu0 }
 0x232   : > { %v1062_v59 = vadd.f32 %v1051_v39, %v970_v0  ;;  %v1053_v60 = vpop.f32.mrb[37].mxu1  ;;  %v2166_v61 = vpop.f32.mrb[38].mxu0 }
 0x233   : > { %v1063_v62 = vadd.f32 %v1053_v60, %v971_v52  ;;  %v1055_v1 = vpop.f32.mrb[38].mxu1  ;;  %v2167_v3 = vpop.f32.mrb[39].mxu0  ;;  %v2545_v61 = vld [vmem:[#allocation4] sm:$0x3] }
 0x234   : > { %v1056_v5 = vpop.f32.mrb[39].mxu1 }
 0x240   : > { %v3802_v6 = vpop.f32.mrb[40].mxu0 }
 0x241   : > { %v1143_v7 = vpop.f32.mrb[40].mxu1  ;;  %v3804_v38 = vpop.f32.mrb[41].mxu0 }
 0x242   : > { %v1154_v8 = vadd.f32 %v1143_v7, %v1062_v59  ;;  %v1145_v11 = vpop.f32.mrb[41].mxu1  ;;  %v2260_v32 = vpop.f32.mrb[42].mxu0  ;;  %v2549_v59 = vsub.s32 0, %v2548_v44 }
 0x243   : > { %v1155_v14 = vadd.f32 %v1145_v11, %v1063_v62  ;;  %v1147_v15 = vpop.f32.mrb[42].mxu1  ;;  %v2261_v16 = vpop.f32.mrb[43].mxu0  ;;  %v2553_v62 = vsub.s32 1, %v2548_v44 }
 0x244   : > { %v1148_v17 = vpop.f32.mrb[43].mxu1  ;;  %v2550_v11 = vrot.slane %v2545_v61, %v2549_v59 }
 0x245   : > { %v2554_v15 = vrot.slane %v2545_v61, %v2553_v62 }
 0x250   : > { %v3806_v18 = vpop.f32.mrb[44].mxu0 }
 0x251   : > { %v1236_v19 = vpop.f32.mrb[44].mxu1  ;;  %v3808_v10 = vpop.f32.mrb[45].mxu0 }
 0x252   : > { %v1247_v34 = vadd.f32 %v1236_v19, %v1154_v8  ;;  %v1238_v22 = vpop.f32.mrb[45].mxu1  ;;  %v2352_v23 = vpop.f32.mrb[46].mxu0 }
 0x253   : > { %v1248_v4 = vadd.f32 %v1238_v22, %v1155_v14  ;;  %v1240_v25 = vpop.f32.mrb[46].mxu1  ;;  %v2353_v26 = vpop.f32.mrb[47].mxu0 }
 0x254   : > { %v1241_v27 = vpop.f32.mrb[47].mxu1 }
 0x259   : > { %v1320_v30 = vpop.f32.mrb[0].mxu1 }
 0x25a   : > { %v1322_v9 = vpop.f32.mrb[1].mxu1 }
 0x25b   : > { %v1324_v35 = vpop.f32.mrb[2].mxu1 }
 0x25c   : > { %v1326_v36 = vpop.f32.mrb[3].mxu1 }
 0x260   : > { %v2440_v42 = vpop.f32.mrb[48].mxu0 }
 0x261   : > { %v1330_v29 = vpop.f32.mrb[48].mxu1  ;;  %v2442_v43 = vpop.f32.mrb[49].mxu0 }
 0x262   : > { %v1341_v47 = vadd.f32 %v1330_v29, %v1247_v34  ;;  %v1332_v0 = vpop.f32.mrb[49].mxu1  ;;  %v2444_v50 = vpop.f32.mrb[50].mxu0 }
 0x263   : > { %v1342_v51 = vadd.f32 %v1332_v0, %v1248_v4  ;;  %v1334_v52 = vpop.f32.mrb[50].mxu1  ;;  %v2445_v53 = vpop.f32.mrb[51].mxu0 }
 0x264   : > { %v1433_v54 = vadd.f32 %v3765_v37, %v1341_v47  ;;  %v1335_v55 = vpop.f32.mrb[51].mxu1 }
 0x265   : > { %v1434_v39 = vadd.f32 %v3767_v41, %v1342_v51  ;;  %v2563_v51 = vld [vmem:[#allocation6] sm:$0xff] }
 0x266   : > { %v1525_v60 = vadd.f32 %v3769_v46, %v1433_v54 }
 0x267   : > { %v1526_v1 = vadd.f32 %v3771_v48, %v1434_v39 }
 0x268   : > { %v1617_v3 = vadd.f32 %v3773_v28, %v1525_v60  ;;  %v2522_v5 = vpop.f32.mrb[0].mxu0 }
 0x269   : > { %v1618_v7 = vadd.f32 %v3775_v56, %v1526_v1  ;;  %v2969_v8 = vadd.f32 %v2522_v5, %v1320_v30  ;;  %v2524_v32 = vpop.f32.mrb[1].mxu0 }
 0x26a   : > { %v1710_v37 = vadd.f32 %v3777_v63, %v1617_v3  ;;  %v2970_v14 = vadd.f32 %v2524_v32, %v1322_v9  ;;  %v2526_v41 = vpop.f32.mrb[2].mxu0 }
 0x26b   : > { %v1711_v16 = vadd.f32 %v3779_v2, %v1618_v7  ;;  %v2971_v46 = vadd.f32 %v2526_v41, %v1324_v35  ;;  %v2528_v17 = vpop.f32.mrb[3].mxu0  ;;  %v2557_v34 = vadd.f32 %v2969_v8, %v2550_v11 }
 0x26c   : > { %v1804_v19 = vadd.f32 %v3781_v12, %v1710_v37  ;;  %v2972_v48 = vadd.f32 %v2528_v17, %v1326_v36  ;;  %v2558_v23 = vadd.f32 %v2970_v14, %v2554_v15 }
 0x26d   : > { %v1805_v28 = vadd.f32 %v3783_v13, %v1711_v16  ;;  %v2559_v22 = vadd.f32 %v2971_v46, %v2550_v11 }
 0x26e   : > { %v1896_v56 = vadd.f32 %v3785_v20, %v1804_v19  ;;  %v2560_v4 = vadd.f32 %v2972_v48, %v2554_v15 }
 0x26f   : > { %v1897_v63 = vadd.f32 %v3787_v21, %v1805_v28  ;;  %v2967_v25 = vpack.c.bf16 %v2559_v22, %v2557_v34 }
 0x270   : > { %v1988_v26 = vadd.f32 %v3790_v31, %v1896_v56  ;;  %v2965_v27 = vpack.c.bf16 %v2560_v4, %v2558_v23  ;;  %v2532_v2 = vpop.f32.mrb[52].mxu0 }
 0x271   : > { %v1989_v30 = vadd.f32 %v3792_v33, %v1897_v63  ;;  %v2534_v9 = vpop.f32.mrb[53].mxu0 }
 0x272   : > { %v2080_v12 = vadd.f32 %v3794_v45, %v1988_v26  ;;  %2966 = vmatprep.subr.bf16.mxu1 %v2965_v27  ;;  %v2536_v13 = vpop.f32.mrb[54].mxu0 }
 0x273   : > { %v2081_v35 = vadd.f32 %v3796_v49, %v1989_v30  ;;  %2968 = vmatpush1.bf16.msra.mxu1 %v2967_v25  ;;  %v2537_v20 = vpop.f32.mrb[55].mxu0 }
 0x274   : > { %v2173_v36 = vadd.f32 %v3798_v57, %v2080_v12  ;;  %v2564_v57 = vld [vmem:[#allocation6 + $0x8] sm:$0xff] }
 0x275   : > { %v2174_v21 = vadd.f32 %v3800_v58, %v2081_v35  ;;  %v2565_v58 = vld [vmem:[#allocation6 + $0x10] sm:$0xff] }
 0x276   : > { %v2267_v40 = vadd.f32 %v3802_v6, %v2173_v36 }
 0x277   : > { %v2268_v31 = vadd.f32 %v3804_v38, %v2174_v21 }
 0x278   : > { %v2359_v29 = vadd.f32 %v3806_v18, %v2267_v40 }
 0x279   : > { %v2360_v33 = vadd.f32 %v3808_v10, %v2268_v31 }
 0x27a   : > { %v2451_v44 = vadd.f32 %v2440_v42, %v2359_v29 }
 0x27b   : > { %v2452_v45 = vadd.f32 %v2442_v43, %v2360_v33 }
 0x27c   : > { %v2543_v47 = vadd.f32 %v2532_v2, %v2451_v44 }
 0x27d   : > { %v2544_v0 = vadd.f32 %v2534_v9, %v2452_v45 }
 0x27e   : > { %v2561_v49 = vadd.f32 %v2550_v11, %v2543_v47 }
 0x27f   : > { %v2562_v50 = vadd.f32 %v2554_v15, %v2544_v0 }
 0x281   : > { %2579 = vmatprep.subr.mxu1 %v2562_v50 }
 0x282   : > { %2580 = vmatpush1.msra.mxu1 %v2561_v49 }
 0x283   : > { %2958 = vmatmul.mubr.msk.f32.vlgmr.msra.gmra.mrb[52].mxu1 %vm274_vm1, %v2563_v51 }
 0x284   : > { %2645 = vmatprep.mubr.f32.mxu1 %v3347_v24 }
 0x287   : > { %2959 = vmatmul.mubr.msk.f32.gmra.mrb[54].mxu1 %vm274_vm1, %v2564_v57 }
 0x288   : > { %2651 = vmatprep.mubr.f32.mxu1 %v3347_v24 }
 0x28b   : > { %2960 = vmatmul.mubr.msk.f32.gmra.mrb[56].mxu1 %vm274_vm1, %v2565_v58 }
 0x356   : > { %v2641_v6 = vpop.f32.mrb[52].mxu1 }
 0x357   : > { %v2643_v38 = vpop.f32.mrb[53].mxu1 }
 0x35a   : > { %v2647_v18 = vpop.f32.mrb[54].mxu1 }
 0x35b   : > { %v2649_v10 = vpop.f32.mrb[55].mxu1  ;;  %v2662_v43 = vrot.slane %v2647_v18, 4 }
 0x35c   : > { %v2665_v54 = vrot.slane %v2649_v10, 4 }
 0x35e   : > { %v2653_v42 = vpop.f32.mrb[56].mxu1 }
 0x35f   : > { %v2663_v52 = vrot.slane %v2653_v42, 4  ;;  %v2655_v53 = vpop.f32.mrb[57].mxu1 }
 0x360   : > { %v2666_v55 = vrot.slane %v2655_v53, 4 }
 0x361   : > { %v2664_v39 = vsel %vm281_vm0, %v2662_v43, %v2663_v52  ;;  %v2674_v59 = vmax.f32 %v2647_v18, %v2663_v52 }
 0x362   : > { %v2672_v60 = vmax.f32 %v2641_v6, %v2664_v39  ;;  %v2667_v24 = vsel %vm281_vm0, %v2665_v54, %v2666_v55  ;;  %v2675_v61 = vmax.f32 %v2649_v10, %v2666_v55 }
 0x363   : > { %v2673_v62 = vmax.f32 %v2643_v38, %v2667_v24 }
 0x364   : > { %v2677_v1 = vmax.f32 %v2674_v59, %v2675_v61 }
 0x365   : > { %v2676_v3 = vmax.f32 %v2672_v60, %v2673_v62 }
 0x366   : > { %v2679_v5 = vmax.f32 %v2677_v1, 0.0 }
 0x367   : > { %v2678_v7 = vmax.f32 %v2676_v3, 0.0 }
 0x368   : > { %2681 = vst [vmem:[%s239_s25 + $0x8] sm:$0xf] %v2679_v5 }
 0x369   : > { %2680 = vst [vmem:[%s239_s25] sm:$0xff] %v2678_v7 }
 0x36a PF: > { %s16_s15 = sadd.s32 1, %s3335_s15  }
 0x36b   : > { %p13_p5 = scmp.ge.s32.totalorder %s16_s15, 4  }
 0x36d   :  { %15 = sbr.rel (!%p13_p5) target bundleno = 2 (0x2), region = 103 }
 0x374   :  { %2703 = vsyncpa [#allocation3], 1 }
 0x375   :  { %2705 = vsyncpa [#allocation3 + $0x1], 1 }
 0x376   :  { %2706 = vsyncpa [#allocation5], 1 }

</bundles_post_ra>
